<compile_context>
chip_gen: v7x
topology: tpu7x:2x2x1
jax: 0.10.0
libtpu: 0.0.40
codegen_flags: <defaults>
</compile_context>

<pallas_src>
import math
from functools import partial

import jax
import jax.numpy as jnp
from jax.experimental import pallas as pl
from jax.experimental.pallas import tpu as pltpu


# --------------------------------------------------------------------------
# Kernels
# --------------------------------------------------------------------------

def _rms_matmul_kernel(x_ref, g_ref, w_ref, o_ref, *, eps):
    """o = RMSNorm(x; g) @ W   (norm in f32, bf16 matmul, f32 accumulation)."""
    x = x_ref[...].astype(jnp.float32)                         # [tm, dim]
    inv = jax.lax.rsqrt(jnp.mean(x * x, axis=-1, keepdims=True) + eps)
    xn = (x * inv) * g_ref[...]                                # [tm, dim] f32
    o_ref[...] = jnp.dot(xn.astype(w_ref.dtype), w_ref[...],
                         preferred_element_type=jnp.float32).astype(o_ref.dtype)


def _attn_kernel(qr_ref, qi_ref, kr_ref, ki_ref, v_ref, cos_ref, sin_ref, o_ref,
                 *, scale):
    """Per-(batch, head) causal attention with rotary embedding fused in."""
    cos = cos_ref[...]                                         # [S, hd/2]
    sin = sin_ref[...]
    qr, qi = qr_ref[...], qi_ref[...]                          # [S, hd/2]
    kr, ki = kr_ref[...], ki_ref[...]

    # Rotary embedding (interleaved-pair convention, on de-interleaved halves).
    qr_rot = qr * cos - qi * sin
    qi_rot = qr * sin + qi * cos
    kr_rot = kr * cos - ki * sin
    ki_rot = kr * sin + ki * cos

    # scores = q_rot @ k_rot.T, split over the two halves (sum is identical).
    dn = (((1,), (1,)), ((), ()))
    s = jax.lax.dot_general(qr_rot, kr_rot, dn, preferred_element_type=jnp.float32)
    s += jax.lax.dot_general(qi_rot, ki_rot, dn, preferred_element_type=jnp.float32)
    s *= scale                                                 # [S, S]

    seq = s.shape[0]
    row = jax.lax.broadcasted_iota(jnp.int32, (seq, seq), 0)
    col = jax.lax.broadcasted_iota(jnp.int32, (seq, seq), 1)
    s = jnp.where(row >= col, s, -jnp.inf)                     # causal mask

    m = jnp.max(s, axis=-1, keepdims=True)
    e = jnp.exp(s - m)
    p = e / jnp.sum(e, axis=-1, keepdims=True)                 # f32 softmax

    o_ref[...] = jnp.dot(p, v_ref[...],
                         preferred_element_type=jnp.float32).astype(o_ref.dtype)


def _proj_residual_kernel(res_ref, a_ref, w_ref, o_ref):
    """o = res + a @ W   (bf16 matmul, f32 accumulation + residual)."""
    y = jnp.dot(a_ref[...].astype(w_ref.dtype), w_ref[...],
                preferred_element_type=jnp.float32)
    o_ref[...] = (res_ref[...].astype(jnp.float32) + y).astype(o_ref.dtype)


def _mlp_kernel(h_ref, g_ref, w13_ref, w2_ref, o_ref, acc_ref, xn_ref, *, eps, th):
    """out = h + W2 @ (SiLU(W1 @ RMSNorm(h)) * (W3 @ RMSNorm(h))).

    Grid = (token tile 'parallel', hidden tile 'arbitrary'); w1|w3 are packed
    per hidden tile so one matmul produces gate and up; f32 VMEM accumulator.
    """
    kh = pl.program_id(1)

    @pl.when(kh == 0)
    def _():
        x = h_ref[...].astype(jnp.float32)
        inv = jax.lax.rsqrt(jnp.mean(x * x, axis=-1, keepdims=True) + eps)
        xn_ref[...] = ((x * inv) * g_ref[...]).astype(xn_ref.dtype)   # cache bf16
        acc_ref[...] = jnp.zeros_like(acc_ref)

    xn = xn_ref[...]                                           # [tm, dim] bf16
    h13 = jnp.dot(xn, w13_ref[...], preferred_element_type=jnp.float32)  # [tm, 2*th]
    gate = h13[:, :th]
    up = h13[:, th:]
    act = (gate * jax.nn.sigmoid(gate)) * up                   # f32 SiLU epilogue
    acc_ref[...] += jnp.dot(act.astype(w2_ref.dtype), w2_ref[...],
                            preferred_element_type=jnp.float32)

    @pl.when(kh == pl.num_programs(1) - 1)
    def _():
        o_ref[...] = (h_ref[...].astype(jnp.float32) + acc_ref[...]).astype(o_ref.dtype)
    # TODO(synk): nn.Dropout is identity (p=0.0 / eval); training dropout would
    # use pltpu.prng_seed + pltpu.prng_random_bits for the mask.


# --------------------------------------------------------------------------
# Host-side wrapper
# --------------------------------------------------------------------------

def decoder_layer_forward(x, packed, *, n_heads, n_kv_heads, eps,
                          freqs_cos, freqs_sin, token_tile=256, hidden_tile=256):
    B, S, dim = x.shape
    hd = dim // n_heads
    hd2 = hd // 2
    n_rep = n_heads // n_kv_heads
    qkv_dim = (n_heads + 2 * n_kv_heads) * hd
    hidden = packed["w13"].shape[1] // 2
    th = hidden_tile
    assert hidden % th == 0, "hidden dim must be divisible by hidden_tile"

    N = B * S
    tm = min(token_tile, N)
    assert N % tm == 0 and tm % 8 == 0, "token count must tile by a multiple of 8"
    n_tok_tiles = N // tm

    x2d = x.reshape(N, dim)

    cp_1d = pltpu.CompilerParams(dimension_semantics=("parallel",),
                                 vmem_limit_bytes=48 * 1024 * 1024)

    # ---- 1. fused attention-RMSNorm + packed QKV projection ----------------
    qkv = pl.pallas_call(
        partial(_rms_matmul_kernel, eps=eps),
        out_shape=jax.ShapeDtypeStruct((N, qkv_dim), jnp.float32),
        grid_spec=pltpu.PrefetchScalarGridSpec(
            num_scalar_prefetch=0,
            grid=(n_tok_tiles,),
            in_specs=[
                pl.BlockSpec((tm, dim), lambda i: (i, 0)),
                pl.BlockSpec((1, dim), lambda i: (0, 0)),
                pl.BlockSpec((dim, qkv_dim), lambda i: (0, 0)),
            ],
            out_specs=pl.BlockSpec((tm, qkv_dim), lambda i: (i, 0)),
        ),
        compiler_params=cp_1d,
    )(x2d, packed["attn_norm"], packed["wqkv"])

    q = qkv[:, :n_heads * hd].reshape(B, S, n_heads, hd).transpose(0, 2, 1, 3)
    k = qkv[:, n_heads * hd:(n_heads + n_kv_heads) * hd] \
        .reshape(B, S, n_kv_heads, hd).transpose(0, 2, 1, 3)
    v = qkv[:, (n_heads + n_kv_heads) * hd:] \
        .reshape(B, S, n_kv_heads, hd).transpose(0, 2, 1, 3)
    # De-interleaved RoPE layout (real half | imag half) was baked into wq/wk.
    qr, qi = q[..., :hd2], q[..., hd2:]
    kr, ki = k[..., :hd2], k[..., hd2:]

    # ---- 2. fused RoPE + causal attention, one (batch, head) per step ------
    qspec = pl.BlockSpec((None, None, S, hd2), lambda b, h: (b, h, 0, 0))
    kspec = pl.BlockSpec((None, None, S, hd2), lambda b, h: (b, h // n_rep, 0, 0))
    attn = pl.pallas_call(
        partial(_attn_kernel, scale=1.0 / math.sqrt(hd)),
        out_shape=jax.ShapeDtypeStruct((B, n_heads, S, hd), jnp.float32),
        grid_spec=pltpu.PrefetchScalarGridSpec(
            num_scalar_prefetch=0,
            grid=(B, n_heads),
            in_specs=[
                qspec, qspec, kspec, kspec,
                pl.BlockSpec((None, None, S, hd), lambda b, h: (b, h // n_rep, 0, 0)),
                pl.BlockSpec((S, hd2), lambda b, h: (0, 0)),
                pl.BlockSpec((S, hd2), lambda b, h: (0, 0)),
            ],
            out_specs=pl.BlockSpec((None, None, S, hd), lambda b, h: (b, h, 0, 0)),
        ),
        compiler_params=pltpu.CompilerParams(
            dimension_semantics=("parallel", "parallel")),
    )(qr, qi, kr, ki, v, freqs_cos, freqs_sin)

    attn2d = attn.transpose(0, 2, 1, 3).reshape(N, n_heads * hd)

    # ---- 3. output projection + first residual -----------------------------
    h2d = pl.pallas_call(
        _proj_residual_kernel,
        out_shape=jax.ShapeDtypeStruct((N, dim), jnp.float32),
        grid_spec=pltpu.PrefetchScalarGridSpec(
            num_scalar_prefetch=0,
            grid=(n_tok_tiles,),
            in_specs=[
                pl.BlockSpec((tm, dim), lambda i: (i, 0)),
                pl.BlockSpec((tm, dim), lambda i: (i, 0)),
                pl.BlockSpec((dim, dim), lambda i: (0, 0)),
            ],
            out_specs=pl.BlockSpec((tm, dim), lambda i: (i, 0)),
        ),
        compiler_params=cp_1d,
    )(x2d, attn2d, packed["wo"])

    # ---- 4. fused ffn-RMSNorm + SwiGLU MLP + second residual ----------------
    out2d = pl.pallas_call(
        partial(_mlp_kernel, eps=eps, th=th),
        out_shape=jax.ShapeDtypeStruct((N, dim), jnp.float32),
        grid_spec=pltpu.PrefetchScalarGridSpec(
            num_scalar_prefetch=0,
            grid=(n_tok_tiles, hidden // th),
            in_specs=[
                pl.BlockSpec((tm, dim), lambda i, kh: (i, 0)),
                pl.BlockSpec((1, dim), lambda i, kh: (0, 0)),
                pl.BlockSpec((dim, 2 * th), lambda i, kh: (0, kh)),
                pl.BlockSpec((th, dim), lambda i, kh: (kh, 0)),
            ],
            out_specs=pl.BlockSpec((tm, dim), lambda i, kh: (i, 0)),
            scratch_shapes=[
                pltpu.VMEM((tm, dim), jnp.float32),    # f32 accumulator
                pltpu.VMEM((tm, dim), jnp.bfloat16),   # cached RMSNorm(h)
            ],
        ),
        compiler_params=pltpu.CompilerParams(
            dimension_semantics=("parallel", "arbitrary"),
            vmem_limit_bytes=48 * 1024 * 1024),
    )(h2d, packed["ffn_norm"], packed["w13"], packed["w2"])

    return out2d.reshape(B, S, dim)


# --------------------------------------------------------------------------
# Parameters / packing / freqs
# --------------------------------------------------------------------------

def _round_hidden(dim, hidden_dim, multiple_of):
    if hidden_dim is None:
        hidden_dim = 4 * dim
        hidden_dim = int(2 * hidden_dim / 3)
        hidden_dim = multiple_of * ((hidden_dim + multiple_of - 1) // multiple_of)
    return hidden_dim


def init_params(key, dim, n_heads, n_kv_heads, hidden_dim, multiple_of):
    hd = dim // n_heads
    hidden = _round_hidden(dim, hidden_dim, multiple_of)
    ks = jax.random.split(key, 7)

    def lin(k, fan_in, fan_out):     # stored [in, out] = torch weight transposed
        b = 1.0 / math.sqrt(fan_in)
        return jax.random.uniform(k, (fan_in, fan_out), jnp.float32, -b, b)

    params = dict(
        wq=lin(ks[0], dim, n_heads * hd),
        wk=lin(ks[1], dim, n_kv_heads * hd),
        wv=lin(ks[2], dim, n_kv_heads * hd),
        wo=lin(ks[3], n_heads * hd, dim),
        w1=lin(ks[4], dim, hidden),
        w2=lin(ks[5], hidden, dim),
        w3=lin(ks[6], dim, hidden),
        attn_norm=jnp.ones((dim,), jnp.float32),
        ffn_norm=jnp.ones((dim,), jnp.float32),
    )
    return params, hidden


def pack_params(params, *, n_heads, n_kv_heads, head_dim, hidden_tile):
    """Pack/permute weights for the kernels and cast projections to bf16."""
    hd = head_dim
    dim = params["w1"].shape[0]
    hidden = params["w1"].shape[1]
    bf = lambda w: w.astype(jnp.bfloat16)

    # Per-head column permutation: interleaved (even, odd) -> (real half, imag half).
    perm = jnp.concatenate([jnp.arange(0, hd, 2), jnp.arange(1, hd, 2)])

    def permute_heads(w, nh):
        return w.reshape(dim, nh, hd)[:, :, perm].reshape(dim, nh * hd)

    wqkv = jnp.concatenate(
        [permute_heads(params["wq"], n_heads),
         permute_heads(params["wk"], n_kv_heads),
         params["wv"]], axis=1)

    # Interleave w1/w3 per hidden tile so each tile's [gate | up] is contiguous.
    th = hidden_tile
    n_t = hidden // th
    w13 = jnp.concatenate(
        [params["w1"].reshape(dim, n_t, th), params["w3"].reshape(dim, n_t, th)],
        axis=2).reshape(dim, 2 * hidden)

    return dict(
        wqkv=bf(wqkv), wo=bf(params["wo"]), w13=bf(w13), w2=bf(params["w2"]),
        attn_norm=params["attn_norm"].reshape(1, dim),
        ffn_norm=params["ffn_norm"].reshape(1, dim),
    )


def compute_freqs(head_dim, seq_len, theta=10000.0):
    # Mirrors Tools.compute_fre_sin_and_cos (including its positive exponent).
    fre = theta ** (jnp.arange(0, head_dim, 2, dtype=jnp.float32) / head_dim)
    t = jnp.arange(seq_len, dtype=jnp.float32)[:, None]
    ang = t * fre[None, :]
    return jnp.cos(ang), jnp.sin(ang)


# --------------------------------------------------------------------------
# Pure-JAX reference (mirrors the PyTorch module + the kernels' bf16 casts)
# --------------------------------------------------------------------------

def _rmsnorm_ref(x, g, eps):
    xf = x.astype(jnp.float32)
    return (xf * jax.lax.rsqrt(jnp.mean(xf * xf, axis=-1, keepdims=True) + eps)) * g


def _mm(a, w):
    return jnp.dot(a.astype(jnp.bfloat16), w.astype(jnp.bfloat16),
                   preferred_element_type=jnp.float32)


def _rope_ref(x, cos, sin):           # x: [B, S, H, hd], interleaved pairs
    xr, xi = x[..., 0::2], x[..., 1::2]
    c = cos[None, :, None, :]
    s = sin[None, :, None, :]
    out_r = xr * c - xi * s
    out_i = xr * s + xi * c
    return jnp.stack([out_r, out_i], axis=-1).reshape(x.shape)


def reference_decoder_layer(x, params, *, n_heads, n_kv_heads, eps, cos, sin):
    B, S, dim = x.shape
    hd = dim // n_heads
    n_rep = n_heads // n_kv_heads

    xn = _rmsnorm_ref(x, params["attn_norm"], eps).reshape(-1, dim)
    xq = _mm(xn, params["wq"]).reshape(B, S, n_heads, hd)
    xk = _mm(xn, params["wk"]).reshape(B, S, n_kv_heads, hd)
    xv = _mm(xn, params["wv"]).reshape(B, S, n_kv_heads, hd)

    xq = _rope_ref(xq, cos, sin)
    xk = _rope_ref(xk, cos, sin)
    if n_rep > 1:
        xk = jnp.repeat(xk, n_rep, axis=2)
        xv = jnp.repeat(xv, n_rep, axis=2)

    q = xq.transpose(0, 2, 1, 3)
    k = xk.transpose(0, 2, 1, 3)
    v = xv.transpose(0, 2, 1, 3)
    scores = jnp.einsum("bhqd,bhkd->bhqk", q, k) / math.sqrt(hd)
    mask = jnp.tril(jnp.ones((S, S), dtype=bool))
    scores = jnp.where(mask[None, None], scores, -jnp.inf)
    p = jax.nn.softmax(scores, axis=-1)
    o = jnp.einsum("bhqk,bhkd->bhqd", p, v)
    o = o.transpose(0, 2, 1, 3).reshape(-1, dim)

    h = x + _mm(o, params["wo"]).reshape(B, S, dim)

    hn = _rmsnorm_ref(h, params["ffn_norm"], eps).reshape(-1, dim)
    gate = _mm(hn, params["w1"])
    up = _mm(hn, params["w3"])
    act = jax.nn.silu(gate) * up
    mlp = _mm(act, params["w2"]).reshape(B, S, dim)
    return h + mlp


# --------------------------------------------------------------------------

if __name__ == "__main__":
    key = jax.random.PRNGKey(0)
    kx, kp = jax.random.split(key)

    # ModelArgs defaults: dim=288, n_heads=6, n_kv_heads=6, multiple_of=32,
    # hidden_dim=None -> 768, norm_eps=1e-5, dropout=0.0; small batch / seq.
    dim, n_heads, n_kv_heads, multiple_of, eps = 288, 6, 6, 32, 1e-5
    batch, seq = 2, 128
    head_dim = dim // n_heads
    hidden_tile = 256                      # use 1024-2048 at production sizes

    params, hidden = init_params(kp, dim, n_heads, n_kv_heads, None, multiple_of)
    packed = pack_params(params, n_heads=n_heads, n_kv_heads=n_kv_heads,
                         head_dim=head_dim, hidden_tile=hidden_tile)
    cos, sin = compute_freqs(head_dim, seq)

    x = jax.random.normal(kx, (batch, seq, dim), jnp.float32)

    out = decoder_layer_forward(
        x, packed, n_heads=n_heads, n_kv_heads=n_kv_heads, eps=eps,
        freqs_cos=cos, freqs_sin=sin, token_tile=128, hidden_tile=hidden_tile)
    out = jax.block_until_ready(out)

    ref = reference_decoder_layer(x, params, n_heads=n_heads,
                                  n_kv_heads=n_kv_heads, eps=eps, cos=cos, sin=sin)
    assert out.shape == x.shape, (out.shape, x.shape)
    max_err = float(jnp.max(jnp.abs(out - ref)))
    assert jnp.allclose(out, ref, atol=2e-2, rtol=2e-2), f"mismatch, max|err|={max_err}"

    print("KERNEL_OK")
</pallas_src>

<mosaic_0001>
module attributes {stable_mosaic.version = 11 : i64} {
  func.func @_rms_matmul_kernel(%arg0: i32, %arg1: memref<128x288xf32, #tpu.memory_space<vmem>>, %arg2: memref<1x288xf32, #tpu.memory_space<vmem>>, %arg3: memref<288x864xbf16, #tpu.memory_space<vmem>>, %arg4: memref<128x864xf32, #tpu.memory_space<vmem>>) attributes {dimension_semantics = [#tpu.dimension_semantics<parallel>], iteration_bounds = array<i64: 2>, scalar_prefetch = 0 : i64, scratch_operands = 0 : i64, tpu.core_type = #tpu.core_type<tc>, window_params = [{transform_indices = @transform_0, window_bounds = array<i64: 128, 288>}, {pipeline_mode = #tpu.pipeline_mode<synchronous>, transform_indices = @transform_1, window_bounds = array<i64: 1, 288>}, {pipeline_mode = #tpu.pipeline_mode<synchronous>, transform_indices = @transform_2, window_bounds = array<i64: 288, 864>}, {transform_indices = @transform_3, window_bounds = array<i64: 128, 864>}]} {
    %c0 = arith.constant 0 : index
    %c0_0 = arith.constant 0 : index
    %0 = vector.load %arg1[%c0, %c0_0] : memref<128x288xf32, #tpu.memory_space<vmem>>, vector<128x288xf32>
    %1 = arith.mulf %0, %0 : vector<128x288xf32>
    %cst = arith.constant dense<0.000000e+00> : vector<128xf32>
    %2 = vector.multi_reduction <add>, %1, %cst [1] : vector<128x288xf32> to vector<128xf32>
    %3 = vector.shape_cast %2 : vector<128xf32> to vector<128x1xf32>
    %cst_1 = arith.constant 2.880000e+02 : f32
    %4 = vector.broadcast %cst_1 : f32 to vector<128x1xf32>
    %5 = arith.divf %3, %4 : vector<128x1xf32>
    %cst_2 = arith.constant 9.99999974E-6 : f32
    %6 = vector.broadcast %cst_2 : f32 to vector<128x1xf32>
    %7 = arith.addf %5, %6 : vector<128x1xf32>
    %8 = math.rsqrt %7 : vector<128x1xf32>
    %9 = vector.broadcast %8 : vector<128x1xf32> to vector<128x288xf32>
    %10 = arith.mulf %0, %9 : vector<128x288xf32>
    %c0_3 = arith.constant 0 : index
    %c0_4 = arith.constant 0 : index
    %11 = vector.load %arg2[%c0_3, %c0_4] : memref<1x288xf32, #tpu.memory_space<vmem>>, vector<1x288xf32>
    %12 = vector.broadcast %11 : vector<1x288xf32> to vector<128x288xf32>
    %13 = arith.mulf %10, %12 : vector<128x288xf32>
    %14 = arith.truncf %13 : vector<128x288xf32> to vector<128x288xbf16>
    %c0_5 = arith.constant 0 : index
    %c0_6 = arith.constant 0 : index
    %15 = vector.load %arg3[%c0_5, %c0_6] : memref<288x864xbf16, #tpu.memory_space<vmem>>, vector<288x864xbf16>
    %cst_7 = arith.constant dense<0.000000e+00> : vector<128x864xf32>
    %16 = tpu.matmul %14, %15, %cst_7 {dimension_numbers = #tpu.dot_dimension_numbers<[1], [0], [0], [1], [0, 0, 1, 1], [], []>} : vector<128x288xbf16>, vector<288x864xbf16>, vector<128x864xf32> -> vector<128x864xf32>
    %c0_8 = arith.constant 0 : index
    %c0_9 = arith.constant 0 : index
    %17 = vector.load %arg4[%c0_8, %c0_9] : memref<128x864xf32, #tpu.memory_space<vmem>>, vector<128x864xf32>
    tpu.vector_store %arg4[%c0_8, %c0_9], %16 {strides = array<i32>} : memref<128x864xf32, #tpu.memory_space<vmem>>, vector<128x864xf32>,
    return
  }
  func.func @transform_0(%arg0: i32) -> (i32, i32) {
    %c0_i32 = arith.constant 0 : i32
    %c0_i32_0 = arith.constant 0 : i32
    return %arg0, %c0_i32 : i32, i32
  }
  func.func @transform_1(%arg0: i32) -> (i32, i32) {
    %c0_i32 = arith.constant 0 : i32
    %c0_i32_0 = arith.constant 0 : i32
    %c0_i32_1 = arith.constant 0 : i32
    return %c0_i32, %c0_i32_0 : i32, i32
  }
  func.func @transform_2(%arg0: i32) -> (i32, i32) {
    %c0_i32 = arith.constant 0 : i32
    %c0_i32_0 = arith.constant 0 : i32
    %c0_i32_1 = arith.constant 0 : i32
    return %c0_i32, %c0_i32_0 : i32, i32
  }
  func.func @transform_3(%arg0: i32) -> (i32, i32) {
    %c0_i32 = arith.constant 0 : i32
    %c0_i32_0 = arith.constant 0 : i32
    return %arg0, %c0_i32 : i32, i32
  }
}

</mosaic_0001>

<bundles_post_ra>
// kernel: tpu_custom_call.1
= control target key start
LH: loop header
LB: loop body
LE: loop exit
PB: predicated region body
PF: predicated region fallthrough
CT: control target
= control target key end

     0   :  { %s3039_s12 = smov 0   ;;  %s4091_s0 = inlined_call_operand.vmem [shape: f32[256,288], index: 0, kind: input, shape index: {}]   ;;  %s4092_s1 = inlined_call_operand.vmem [shape: f32[1,288], index: 1, kind: input, shape index: {}]   ;;  %s4093_s2 = inlined_call_operand.vmem [shape: bf16[288,864], index: 2, kind: input, shape index: {}]   ;;  %s4094_s3 = inlined_call_operand.vmem [shape: f32[256,864], index: 3, kind: output, shape index: {}]  }
   0x1 LB: > { %s2402_s13 = sadd.s32 4294967295, %s3016_s12   ;;  %p2406_p0 = scmp.ge.s32.totalorder %s3016_s12, 1  ;;  %s3016_s12 = sphi %s3039_s12, %s13_s12  }
   0x2   : > { %p139_p1 = scmp.lt.s32.totalorder %s3016_s12, 3 }
   0x4   : > { %p140_p2 = pnand %p2406_p0, %p139_p1 }
   0x6   : > { %143 = sbr.rel (%p140_p2) target bundleno = 676 (0x2a4), region = 32 }
   0xd   : > { %s2407_s14 = sshll.u32 %s2402_s13, 4  ;;  %v2788_v0 = vld [vmem:[%s4093_s2 + $0x4] ss:$28 sps:$4 sm:$0xff]   ;;  %v2791_v2 = vld [vmem:[%s4093_s2 + $0x3c] ss:$28 sps:$4 sm:$0xff]   ;;  %vm277_vm0 = vcmask 261120  }
   0xe   : > { %p166_p3 = scmp.lt.s32.totalorder %s2407_s14, 31  ;;  %v2790_v1 = vld [vmem:[%s4093_s2] ss:$28 sps:$4 sm:$0xff]   ;;  %1359 = vmatprep.subr.bf16.mxu0 %v2788_v0  ;;  %v2793_v3 = vld [vmem:[%s4093_s2 + $0x38] ss:$28 sps:$4 sm:$0xff]   ;;  %vm2237_vm1 = vcmask 785408  }
   0xf   : > { %1360 = vmatpush1.bf16.msra.mxu0 %v2790_v1  ;;  %v2794_v4 = vld [vmem:[%s4093_s2 + $0x74] ss:$28 sps:$4 sm:$0xff]   ;;  %v2797_v6 = vld [vmem:[%s4093_s2 + $0xac] ss:$28 sps:$4 sm:$0xff]   ;;  %v2800_v30 = vld [vmem:[%s4093_s2 + $0xe4] ss:$28 sps:$4 sm:$0xff]  }
  0x10   : > { %s4105_s14 = smov (!%p166_p3, %s2407_s14), 31  ;;  %1361 = vmatprep.subr.bf16.mxu0 %v2791_v2  ;;  %v2796_v5 = vld [vmem:[%s4093_s2 + $0x70] ss:$28 sps:$4 sm:$0xff]   ;;  %v2799_v16 = vld [vmem:[%s4093_s2 + $0xa8] ss:$28 sps:$4 sm:$0xff]  }
  0x11   : > { %s2777_s25 = smul.u32 24, %s4105_s14  ;;  %v2802_v56 = vld [vmem:[%s4093_s2 + $0xe0] ss:$28 sps:$4 sm:$0xff]  }
  0x12   : > { %s2778_s30 = smul.u32 56, %s4105_s14 }
  0x13   : > { %s3068_s28 = scalar_lea.vmem %s4091_s0, %s2777_s25  ;;  %1362 = vmatpush1.bf16.msra.mxu0 %v2793_v3 }
  0x14   : > { %v3077_v7 = vld [vmem:[%s3068_s28] sm:$0xff]  ;;  %v3080_v8 = vld [vmem:[%s3068_s28 + $0x8] sm:$0xff]  ;;  %v3083_v9 = vld [vmem:[%s3068_s28 + $0x10] sm:$0xff]  ;;  %1363 = vmatprep.subr.bf16.mxu0 %v2794_v4 }
  0x15   : > { %v228_v10 = vmul.f32 %v3077_v7, %v3077_v7  ;;  %v229_v11 = vmul.f32 %v3080_v8, %v3080_v8  ;;  %v230_v12 = vmul.f32 %v3083_v9, %v3083_v9  ;;  %v3092_v13 = vld [vmem:[%s3068_s28 + $0x30] sm:$0xff]  ;;  %v3095_v14 = vld [vmem:[%s3068_s28 + $0x38] sm:$0xff]  ;;  %v3098_v15 = vld [vmem:[%s3068_s28 + $0x40] sm:$0xff] }
  0x16   : > { %v234_v17 = vmul.f32 %v3092_v13, %v3092_v13  ;;  %v235_v18 = vmul.f32 %v3095_v14, %v3095_v14  ;;  %v236_v19 = vmul.f32 %v3098_v15, %v3098_v15  ;;  %v3110_v20 = vld [vmem:[%s3068_s28 + $0x18] sm:$0xff]  ;;  %v3113_v21 = vld [vmem:[%s3068_s28 + $0x20] sm:$0xff]  ;;  %v3116_v22 = vld [vmem:[%s3068_s28 + $0x28] sm:$0xff] }
  0x17   : > { %v276_v23 = vadd.f32 %v229_v11, %v228_v10  ;;  %v278_v24 = vsel %vm277_vm0, %v230_v12, 0.0  ;;  %v231_v25 = vmul.f32 %v3110_v20, %v3110_v20  ;;  %v232_v26 = vmul.f32 %v3113_v21, %v3113_v21  ;;  %v3124_v27 = vld [vmem:[%s3068_s28 + $0x48] sm:$0xff]  ;;  %v3127_v28 = vld [vmem:[%s3068_s28 + $0x50] sm:$0xff]  ;;  %v3130_v29 = vld [vmem:[%s3068_s28 + $0x58] sm:$0xff]  ;;  %1364 = vmatpush1.bf16.msra.mxu0 %v2796_v5 }
  0x18   : > { %v287_v31 = vadd.f32 %v235_v18, %v234_v17  ;;  %v288_v32 = vsel %vm277_vm0, %v236_v19, 0.0  ;;  %v233_v33 = vmul.f32 %v3116_v22, %v3116_v22  ;;  %v237_v34 = vmul.f32 %v3124_v27, %v3124_v27  ;;  %v3141_v35 = vld [vmem:[%s3068_s28 + $0x78] sm:$0xff]  ;;  %v3144_v36 = vld [vmem:[%s3068_s28 + $0x80] sm:$0xff]  ;;  %v3147_v37 = vld [vmem:[%s3068_s28 + $0x88] sm:$0xff]  ;;  %1365 = vmatprep.subr.bf16.mxu0 %v2797_v6 }
  0x19   : > { %v279_v38 = vadd.f32 %v278_v24, %v276_v23  ;;  %v282_v39 = vadd.f32 %v232_v26, %v231_v25  ;;  %v238_v40 = vmul.f32 %v3127_v28, %v3127_v28  ;;  %v239_v41 = vmul.f32 %v3130_v29, %v3130_v29  ;;  %v3154_v42 = vld [vmem:[%s3068_s28 + $0x60] sm:$0xff]  ;;  %v3157_v43 = vld [vmem:[%s3068_s28 + $0x68] sm:$0xff]  ;;  %v3160_v44 = vld [vmem:[%s3068_s28 + $0x70] sm:$0xff] }
  0x1a   : > { %v289_v45 = vadd.f32 %v288_v32, %v287_v31  ;;  %v283_v46 = vsel %vm277_vm0, %v233_v33, 0.0  ;;  %v243_v47 = vmul.f32 %v3141_v35, %v3141_v35  ;;  %v244_v48 = vmul.f32 %v3144_v36, %v3144_v36  ;;  %v3168_v49 = vld [vmem:[%s3068_s28 + $0xa8] sm:$0xff]  ;;  %v3171_v50 = vld [vmem:[%s3068_s28 + $0xb0] sm:$0xff]  ;;  %v3177_v55 = vld [vmem:[%s3068_s28 + $0xb8] sm:$0xff] }
  0x1b   : > { %280 = vadd.xlane.f32.xlu0 %v279_v38  ;;  %v284_v51 = vadd.f32 %v283_v46, %v282_v39  ;;  %v292_v52 = vadd.f32 %v238_v40, %v237_v34  ;;  %v293_v53 = vsel %vm277_vm0, %v239_v41, 0.0  ;;  %v245_v54 = vmul.f32 %v3147_v37, %v3147_v37  ;;  %1366 = vmatpush1.bf16.msra.mxu0 %v2799_v16  ;;  %v3189_v61 = vld [vmem:[%s3068_s28 + $0x90] sm:$0xff]  ;;  %v3192_v62 = vld [vmem:[%s3068_s28 + $0x98] sm:$0xff]  ;;  %v3195_v63 = vld [vmem:[%s3068_s28 + $0xa0] sm:$0xff] }
  0x1c   : > { %290 = vadd.xlane.f32.xlu1 %v289_v45  ;;  %v302_v57 = vadd.f32 %v244_v48, %v243_v47  ;;  %v240_v58 = vmul.f32 %v3154_v42, %v3154_v42  ;;  %v241_v59 = vmul.f32 %v3157_v43, %v3157_v43  ;;  %v242_v60 = vmul.f32 %v3160_v44, %v3160_v44  ;;  %v3203_v4 = vld [vmem:[%s3068_s28 + $0xd8] sm:$0xff]  ;;  %v3206_v5 = vld [vmem:[%s3068_s28 + $0xe0] sm:$0xff]  ;;  %v3215_v17 = vld [vmem:[%s3068_s28 + $0xe8] sm:$0xff] }
  0x1d   : > { %v294_v0 = vadd.f32 %v293_v53, %v292_v52  ;;  %v303_v1 = vsel %vm277_vm0, %v245_v54, 0.0  ;;  %v249_v2 = vmul.f32 %v3168_v49, %v3168_v49  ;;  %v250_v3 = vmul.f32 %v3171_v50, %v3171_v50  ;;  %1367 = vmatprep.subr.bf16.mxu0 %v2800_v30  ;;  %v2803_v6 = vld [vmem:[%s4093_s2 + $0x11c] ss:$28 sps:$4 sm:$0xff]   ;;  %v3224_v25 = vld [vmem:[%s3068_s28 + $0xc0] sm:$0xff]  ;;  %v3227_v26 = vld [vmem:[%s3068_s28 + $0xc8] sm:$0xff] }
  0x1e   : > { %v304_v10 = vadd.f32 %v303_v1, %v302_v57  ;;  %v297_v11 = vadd.f32 %v241_v59, %v240_v58  ;;  %v298_v12 = vsel %vm277_vm0, %v242_v60, 0.0  ;;  %v251_v16 = vmul.f32 %v3177_v55, %v3177_v55  ;;  %v3230_v30 = vld [vmem:[%s3068_s28 + $0xd0] sm:$0xff]  ;;  %v213_v38 = vld [vmem:[%s3068_s28 + $0x108] sm:$0xff]  ;;  %v3248_v47 = vld [vmem:[%s3068_s28 + $0x118] sm:$0xff] }
  0x1f   : > { %285 = vadd.xlane.f32.xlu0 %v284_v51  ;;  %v312_v18 = vadd.f32 %v250_v3, %v249_v2  ;;  %v246_v19 = vmul.f32 %v3189_v61, %v3189_v61  ;;  %v247_v23 = vmul.f32 %v3192_v62, %v3192_v62  ;;  %v248_v24 = vmul.f32 %v3195_v63, %v3195_v63  ;;  %v3239_v39 = vld [vmem:[%s3068_s28 + $0x110] sm:$0xff]  ;;  %v3254_v51 = vld [vmem:[%s3068_s28 + $0xf8] sm:$0xff]  ;;  %v3263_v57 = vld [vmem:[%s3068_s28 + $0x100] sm:$0xff] }
  0x20   : > { %295 = vadd.xlane.f32.xlu1 %v294_v0  ;;  %v299_v31 = vadd.f32 %v298_v12, %v297_v11  ;;  %v313_v32 = vsel %vm277_vm0, %v251_v16, 0.0  ;;  %v255_v33 = vmul.f32 %v3203_v4, %v3203_v4  ;;  %v256_v34 = vmul.f32 %v3206_v5, %v3206_v5  ;;  %1368 = vmatpush1.bf16.msra.mxu0 %v2802_v56  ;;  %v2805_v40 = vld [vmem:[%s4093_s2 + $0x118] ss:$28 sps:$4 sm:$0xff]   ;;  %v220_v59 = vld [vmem:[%s3068_s28 + $0x140] sm:$0xff] }
  0x21   : > { %v307_v41 = vadd.f32 %v247_v23, %v246_v19  ;;  %v308_v45 = vsel %vm277_vm0, %v248_v24, 0.0  ;;  %v257_v46 = vmul.f32 %v3215_v17, %v3215_v17  ;;  %v3251_v48 = vld [vmem:[%s3068_s28 + $0xf0] sm:$0xff]  ;;  %1369 = vmatprep.subr.bf16.mxu0 %v2803_v6  ;;  %v314_v52 = vadd.f32 %v313_v32, %v312_v18  ;;  %4099 = vst [vmem:[#allocation3_spill] sm:$0xff] %v3263_v57  ;;  %v219_v58 = vld [vmem:[%s3068_s28 + $0x138] sm:$0xff]  ;;  %v216_v3 = vld [vmem:[%s3068_s28 + $0x120] sm:$0xff] }
  0x22   : > { %4098 = vst [vmem:[#allocation2_spill] sm:$0xff] %v3251_v48  ;;  %v252_v53 = vmul.f32 %v3224_v25, %v3224_v25  ;;  %v253_v54 = vmul.f32 %v3227_v26, %v3227_v26  ;;  %v254_v56 = vmul.f32 %v3230_v30, %v3230_v30  ;;  %v322_v0 = vadd.f32 %v256_v34, %v255_v33  ;;  %v3271_v6 = vld [vmem:[%s3068_s28 + $0x128] sm:$0xff]  ;;  %v218_v11 = vld [vmem:[%s3068_s28 + $0x130] sm:$0xff] }
  0x23   : > { %300 = vadd.xlane.f32.xlu0 %v299_v31  ;;  %v309_v60 = vadd.f32 %v308_v45, %v307_v41  ;;  %v261_v1 = vmul.f32 %v213_v38, %v213_v38  ;;  %v262_v2 = vmul.f32 %v3239_v39, %v3239_v39  ;;  %v323_v12 = vsel %vm277_vm0, %v257_v46, 0.0  ;;  %v2806_v23 = vld [vmem:[%s4093_s2 + $0x154] ss:$28 sps:$4 sm:$0xff]   ;;  %v3291_v34 = vld [vmem:[%s3068_s28 + $0x148] sm:$0xff] }
  0x24   : > { %305 = vadd.xlane.f32.xlu1 %v304_v10  ;;  %v317_v16 = vadd.f32 %v253_v54, %v252_v53  ;;  %v318_v18 = vsel %vm277_vm0, %v254_v56, 0.0  ;;  %v263_v19 = vmul.f32 %v3248_v47, %v3248_v47  ;;  %1370 = vmatpush1.bf16.msra.mxu0 %v2805_v40  ;;  %v258_v24 = vmul.f32 %v3251_v48, %v3251_v48  ;;  %v2808_v32 = vld [vmem:[%s4093_s2 + $0x150] ss:$28 sps:$4 sm:$0xff]  }
  0x25   : > { %v259_v10 = vmul.f32 %v3254_v51, %v3254_v51  ;;  %v260_v31 = vmul.f32 %v3263_v57, %v3263_v57  ;;  %v332_v33 = vadd.f32 %v262_v2, %v261_v1  ;;  %4100 = vst [vmem:[#allocation4_spill] sm:$0xff] %v3291_v34  ;;  %v267_v38 = vmul.f32 %v219_v58, %v219_v58  ;;  %v2809_v41 = vld [vmem:[%s4093_s2 + $0x18c] ss:$28 sps:$4 sm:$0xff]   ;;  %v226_v48 = vld [vmem:[%s3068_s28 + $0x170] sm:$0xff]  ;;  %v3301_v2 = vld [vmem:[%s3068_s28 + $0x158] sm:$0xff] }
  0x26   : > { %v268_v40 = vmul.f32 %v220_v59, %v220_v59  ;;  %1371 = vmatprep.subr.bf16.mxu0 %v2806_v23  ;;  %v324_v45 = vadd.f32 %v323_v12, %v322_v0  ;;  %v319_v46 = vadd.f32 %v318_v18, %v317_v16  ;;  %v333_v53 = vsel %vm277_vm0, %v263_v19, 0.0  ;;  %v225_v56 = vld [vmem:[%s3068_s28 + $0x168] sm:$0xff]  ;;  %v222_v1 = vld [vmem:[%s3068_s28 + $0x150] sm:$0xff]  ;;  %v227_v19 = vld [vmem:[%s3068_s28 + $0x178] sm:$0xff] }
  0x27   : > { %310 = vadd.xlane.f32.xlu0 %v309_v60  ;;  %v327_v54 = vadd.f32 %v259_v10, %v258_v24  ;;  %v328_v58 = vsel %vm277_vm0, %v260_v31, 0.0  ;;  %v264_v59 = vmul.f32 %v216_v3, %v216_v3  ;;  %v265_v23 = vmul.f32 %v3271_v6, %v3271_v6  ;;  %v224_v60 = vld [vmem:[%s3068_s28 + $0x160] sm:$0xff] }
  0x28   : > { %315 = vadd.xlane.f32.xlu1 %v314_v52  ;;  %v266_v57 = vmul.f32 %v218_v11, %v218_v11  ;;  %v269_v0 = vmul.f32 %v3291_v34, %v3291_v34  ;;  %1372 = vmatpush1.bf16.msra.mxu0 %v2808_v32  ;;  %v2811_v12 = vld [vmem:[%s4093_s2 + $0x188] ss:$28 sps:$4 sm:$0xff]   ;;  %v334_v16 = vadd.f32 %v333_v53, %v332_v33 }
  0x29   : > { %v342_v18 = vadd.f32 %v268_v40, %v267_v38  ;;  %1373 = vmatprep.subr.bf16.mxu0 %v2809_v41  ;;  %v2812_v52 = vld [vmem:[%s4093_s2 + $0x1c4] ss:$28 sps:$4 sm:$0xff]   ;;  %v329_v3 = vadd.f32 %v328_v58, %v327_v54  ;;  %v337_v11 = vadd.f32 %v265_v23, %v264_v59  ;;  %v270_v24 = vmul.f32 %v222_v1, %v222_v1  ;;  %v2817_v1 = vld [vmem:[%s4093_s2 + $0x1f8] ss:$28 sps:$4 sm:$0xff]  }
  0x2a   : > { %v271_v10 = vmul.f32 %v3301_v2, %v3301_v2  ;;  %v338_v31 = vsel %vm277_vm0, %v266_v57, 0.0  ;;  %v273_v32 = vmul.f32 %v225_v56, %v225_v56  ;;  %v274_v34 = vmul.f32 %v226_v48, %v226_v48  ;;  %v2814_v41 = vld [vmem:[%s4093_s2 + $0x1c0] ss:$28 sps:$4 sm:$0xff]   ;;  %v2818_v58 = vld [vmem:[%s4093_s2 + $0x234] ss:$28 sps:$4 sm:$0xff]  }
  0x2b   : > { %320 = vadd.xlane.f32.xlu0 %v319_v46  ;;  %v272_v33 = vmul.f32 %v224_v60, %v224_v60  ;;  %v343_v38 = vsel %vm277_vm0, %v269_v0, 0.0  ;;  %v275_v40 = vmul.f32 %v227_v19, %v227_v19  ;;  %v2815_v46 = vld [vmem:[%s4093_s2 + $0x1fc] ss:$28 sps:$4 sm:$0xff]   ;;  %v2820_v0 = vld [vmem:[%s4093_s2 + $0x230] ss:$28 sps:$4 sm:$0xff]  }
  0x2c   : > { %325 = vadd.xlane.f32.xlu1 %v324_v45  ;;  %1374 = vmatpush1.bf16.msra.mxu0 %v2811_v12  ;;  %v339_v45 = vadd.f32 %v338_v31, %v337_v11  ;;  %v347_v53 = vadd.f32 %v271_v10, %v270_v24  ;;  %v344_v57 = vadd.f32 %v343_v38, %v342_v18  ;;  %v2832_v23 = vld [vmem:[%s4093_s2 + $0x380] ss:$28 sps:$4 sm:$0xff]   ;;  %v2821_v12 = vld [vmem:[%s4093_s2 + $0x26c] ss:$28 sps:$4 sm:$0xff]   ;;  %v2838_v18 = vld [vmem:[%s4093_s2 + $0x3b8] ss:$28 sps:$4 sm:$0xff]  }
  0x2d   : > { %1375 = vmatprep.subr.bf16.mxu0 %v2812_v52  ;;  %v352_v48 = vadd.f32 %v274_v34, %v273_v32  ;;  %v348_v54 = vsel %vm277_vm0, %v272_v33, 0.0  ;;  %v353_v56 = vsel %vm277_vm0, %v275_v40, 0.0  ;;  %v2830_v34 = vld [vmem:[%s4093_s2 + $0x384] ss:$28 sps:$4 sm:$0xff]   ;;  %v3018_v11 = vmov 0  }
  0x2e   : > { %v349_v59 = vadd.f32 %v348_v54, %v347_v53  ;;  %1472 = vmatprep.subr.bf16.mxu1 %v2830_v34  ;;  %v2823_v19 = vld [vmem:[%s4093_s2 + $0x268] ss:$28 sps:$4 sm:$0xff]   ;;  %1504 = vmatprep.mubr.bf16.mxu1 %v3018_v11  ;;  %v2826_v24 = vld [vmem:[%s4093_s2 + $0x2a0] ss:$28 sps:$4 sm:$0xff]   ;;  %v2829_v31 = vld [vmem:[%s4093_s2 + $0x2d8] ss:$28 sps:$4 sm:$0xff]   ;;  %v456_v54 = vlaneseq }
  0x2f   : > { %330 = vadd.xlane.f32.xlu0 %v329_v3  ;;  %v354_v60 = vadd.f32 %v353_v56, %v352_v48  ;;  %1473 = vmatpush1.bf16.msra.mxu1 %v2832_v23  ;;  %v2824_v52 = vld [vmem:[%s4093_s2 + $0x2a4] ss:$28 sps:$4 sm:$0xff]   ;;  %v2844_v3 = vld [vmem:[%s4093_s2 + $0xc] ss:$28 sps:$4 sm:$0xff]   ;;  %v2827_v10 = vld [vmem:[%s4093_s2 + $0x2dc] ss:$28 sps:$4 sm:$0xff]  }
  0x30   : > { %335 = vadd.xlane.f32.xlu1 %v334_v16  ;;  %1376 = vmatpush1.bf16.msra.mxu0 %v2814_v41  ;;  %v2836_v16 = vld [vmem:[%s4093_s2 + $0x3bc] ss:$28 sps:$4 sm:$0xff]   ;;  %v2833_v32 = vld [vmem:[%s4093_s2 + $0x314] ss:$28 sps:$4 sm:$0xff]   ;;  %v2839_v38 = vld [vmem:[%s4093_s2 + $0x34c] ss:$28 sps:$4 sm:$0xff]  }
  0x31   : > { %1377 = vmatprep.subr.bf16.mxu0 %v2815_v46  ;;  %1474 = vmatprep.subr.bf16.mxu1 %v2836_v16  ;;  %v2835_v33 = vld [vmem:[%s4093_s2 + $0x310] ss:$28 sps:$4 sm:$0xff]   ;;  %v2841_v40 = vld [vmem:[%s4093_s2 + $0x348] ss:$28 sps:$4 sm:$0xff]  }
  0x32   : > { %v2847_v41 = vld [vmem:[%s4093_s2 + $0x14] ss:$28 sps:$4 sm:$0xff]  }
  0x33   : > { %340 = vadd.xlane.f32.xlu0 %v339_v45  ;;  %1475 = vmatpush1.bf16.msra.mxu1 %v2838_v18 }
  0x34   : > { %345 = vadd.xlane.f32.xlu1 %v344_v57  ;;  %1378 = vmatpush1.bf16.msra.mxu0 %v2817_v1 }
  0x35   : > { %1379 = vmatprep.subr.bf16.mxu0 %v2818_v58  ;;  %1585 = vmatprep.subr.bf16.mxu1 %v2844_v3 }
  0x37   : > { %350 = vadd.xlane.f32.xlu0 %v349_v59 }
  0x38   : > { %355 = vadd.xlane.f32.xlu1 %v354_v60  ;;  %1380 = vmatpush1.bf16.msra.mxu0 %v2820_v0  ;;  %v457_v60 = vshrl.u32 %v456_v54, 7 }
  0x39   : > { %1381 = vmatprep.subr.bf16.mxu0 %v2821_v12 }
  0x3a   : > { %v462_v3 = vsub.s32 1, %v457_v60 }
  0x3c   : > { %1382 = vmatpush1.bf16.msra.mxu0 %v2823_v19 }
  0x3d   : > { %1383 = vmatprep.subr.bf16.mxu0 %v2824_v52 }
  0x40   : > { %1384 = vmatpush1.bf16.msra.mxu0 %v2826_v24  ;;  %v466_v24 = vsub.s32 2, %v457_v60 }
  0x41   : > { %1385 = vmatprep.subr.bf16.mxu0 %v2827_v10 }
  0x44   : > { %1386 = vmatpush1.bf16.msra.mxu0 %v2829_v31  ;;  %v454_v31 = vld [vmem:[%s4092_s1] sm:$0x7] }
  0x45   : > { %1387 = vmatprep.subr.bf16.mxu0 %v2833_v32 }
  0x48   : > { %1388 = vmatpush1.bf16.msra.mxu0 %v2835_v33 }
  0x49   : > { %1389 = vmatprep.subr.bf16.mxu0 %v2839_v38 }
  0x4c   : > { %1390 = vmatpush1.bf16.msra.mxu0 %v2841_v40  ;;  %v458_v40 = vsub.s32 0, %v457_v60 }
  0x4d   : > { %1811 = vmatprep.subr.bf16.mxu0 %v2847_v41 }
  0xa8   : > { %v281_v46 = vpop.xlane.xlu0 %280 }
  0xa9   : > { %v358_v45 = vmul.f32 0.0034722222, %v281_v46  ;;  %v291_v53 = vpop.xlane.xlu1 %290 }
  0xaa   : > { %v360_v57 = vmul.f32 0.0034722222, %v291_v53  ;;  %v3391_v53 = vrot.slane %v454_v31, %v466_v24 }
  0xab   : > { %v374_v48 = vadd.f32 1e-05, %v358_v45  ;;  %v3389_v45 = vrot.slane %v454_v31, %v462_v3 }
  0xac   : > { %v376_v56 = vadd.f32 1e-05, %v360_v57  ;;  %v286_v1 = vpop.xlane.xlu0 %285 }
  0xad   : > { %2968 = vrsqrt.f32 %v374_v48  ;;  %v359_v58 = vmul.f32 0.0034722222, %v286_v1  ;;  %v296_v59 = vpop.xlane.xlu1 %295 }
  0xae   : > { %2970 = vrsqrt.f32 %v376_v56  ;;  %v361_v34 = vmul.f32 0.0034722222, %v296_v59 }
  0xaf   : > { %v375_v23 = vadd.f32 1e-05, %v359_v58 }
  0xb0   : > { %v377_v0 = vadd.f32 1e-05, %v361_v34  ;;  %v301_v12 = vpop.xlane.xlu0 %300 }
  0xb1   : > { %2972 = vrsqrt.f32 %v375_v23  ;;  %v306_v16 = vpop.xlane.xlu1 %305  ;;  %v362_v18 = vmul.f32 0.0034722222, %v301_v12  ;;  %v3397_v23 = vrot.slane %v454_v31, %v458_v40 }
  0xb2   : > { %2974 = vrsqrt.f32 %v377_v0  ;;  %v363_v19 = vmul.f32 0.0034722222, %v306_v16 }
  0xb3   : > { %v378_v52 = vadd.f32 1e-05, %v362_v18 }
  0xb4   : > { %v379_v10 = vadd.f32 1e-05, %v363_v19  ;;  %v311_v32 = vpop.xlane.xlu0 %310 }
  0xb5   : > { %2976 = vrsqrt.f32 %v378_v52  ;;  %v316_v33 = vpop.xlane.xlu1 %315  ;;  %v364_v38 = vmul.f32 0.0034722222, %v311_v32 }
  0xb6   : > { %2978 = vrsqrt.f32 %v379_v10  ;;  %v365_v41 = vmul.f32 0.0034722222, %v316_v33 }
  0xb7   : > { %v2969_v46 = vpop.eup %2968  ;;  %v380_v57 = vadd.f32 1e-05, %v364_v38 }
  0xb8   : > { %v2971_v48 = vpop.eup %2970  ;;  %v407_v54 = vmul.f32 %v2969_v46, %v3080_v8  ;;  %v408_v56 = vmul.f32 %v2969_v46, %v3083_v9  ;;  %v381_v1 = vadd.f32 1e-05, %v365_v41  ;;  %v406_v34 = vmul.f32 %v2969_v46, %v3077_v7  ;;  %v321_v60 = vpop.xlane.xlu0 %320 }
  0xb9   : > { %v413_v58 = vmul.f32 %v2971_v48, %v3095_v14  ;;  %v326_v59 = vpop.xlane.xlu1 %325  ;;  %2980 = vrsqrt.f32 %v380_v57  ;;  %v366_v3 = vmul.f32 0.0034722222, %v321_v60  ;;  %v412_v38 = vmul.f32 %v2971_v48, %v3092_v13  ;;  %v2853_v13 = vld [vmem:[%s4093_s2 + $0x4c] ss:$28 sps:$4 sm:$0xff]  }
  0xba   : > { %v472_v12 = vmul.f32 %v3389_v45, %v407_v54  ;;  %v473_v16 = vmul.f32 %v3391_v53, %v408_v56  ;;  %v367_v14 = vmul.f32 0.0034722222, %v326_v59  ;;  %2982 = vrsqrt.f32 %v381_v1  ;;  %v2845_v54 = vld [vmem:[%s4093_s2 + $0x10] ss:$28 sps:$4 sm:$0xff]   ;;  %v2850_v56 = vld [vmem:[%s4093_s2 + $0x44] ss:$28 sps:$4 sm:$0xff]  }
  0xbb   : > { %v2973_v0 = vpop.eup %2972  ;;  %v478_v52 = vmul.f32 %v3389_v45, %v413_v58  ;;  %v471_v31 = vmul.f32 %v3397_v23, %v406_v34 }
  0xbc   : > { %v2975_v18 = vpop.eup %2974  ;;  %v410_v8 = vmul.f32 %v2973_v0, %v3113_v21  ;;  %v411_v9 = vmul.f32 %v2973_v0, %v3116_v22  ;;  %v409_v19 = vmul.f32 %v2973_v0, %v3110_v20  ;;  %v2842_v20 = vld [vmem:[%s4093_s2 + $0x8] ss:$28 sps:$4 sm:$0xff]   ;;  %v331_v60 = vpop.xlane.xlu0 %330  ;;  %v2848_v0 = vld [vmem:[%s4093_s2 + $0x40] ss:$28 sps:$4 sm:$0xff]  }
  0xbd   : > { %v416_v7 = vmul.f32 %v2975_v18, %v3127_v28  ;;  %v414_v28 = vmul.f32 %v2971_v48, %v3098_v15  ;;  %v417_v33 = vmul.f32 %v2975_v18, %v3130_v29  ;;  %v383_v15 = vadd.f32 1e-05, %v367_v14  ;;  %v336_v58 = vpop.xlane.xlu1 %335 }
  0xbe   : > { %v475_v24 = vmul.f32 %v3389_v45, %v410_v8  ;;  %v476_v10 = vmul.f32 %v3391_v53, %v411_v9  ;;  %v474_v32 = vmul.f32 %v3397_v23, %v409_v19  ;;  %v415_v29 = vmul.f32 %v2975_v18, %v3124_v27  ;;  %v2859_v19 = vld [vmem:[%s4093_s2 + $0x84] ss:$28 sps:$4 sm:$0xff]  }
  0xbf   : > { %v2977_v21 = vpop.eup %2976  ;;  %v481_v22 = vmul.f32 %v3389_v45, %v416_v7  ;;  %v382_v48 = vadd.f32 1e-05, %v366_v3  ;;  %v479_v27 = vmul.f32 %v3391_v53, %v414_v28  ;;  %2984 = vrsqrt.f32 %v383_v15 }
  0xc0   : > { %v2979_v40 = vpop.eup %2978  ;;  %v3417_v41 = vpack.c.bf16 %v475_v24, %v472_v12  ;;  %v3419_v46 = vpack.c.bf16 %v476_v10, %v473_v16  ;;  %v3421_v57 = vpack.c.bf16 %v474_v32, %v471_v31  ;;  %v419_v59 = vmul.f32 %v2977_v21, %v3157_v43  ;;  %v2851_v12 = vld [vmem:[%s4093_s2 + $0x48] ss:$28 sps:$4 sm:$0xff]   ;;  %v2854_v31 = vld [vmem:[%s4093_s2 + $0x78] ss:$28 sps:$4 sm:$0xff]  }
  0xc1   : > { %v3429_v1 = vpack.c.bf16 %v481_v22, %v478_v52  ;;  %v422_v34 = vmul.f32 %v2979_v40, %v3144_v36  ;;  %v2856_v36 = vld [vmem:[%s4093_s2 + $0x7c] ss:$28 sps:$4 sm:$0xff]   ;;  %v482_v43 = vmul.f32 %v3391_v53, %v417_v33  ;;  %v477_v16 = vmul.f32 %v3397_v23, %v412_v38  ;;  %v346_v38 = vpop.xlane.xlu1 %345 }
  0xc2   : > { %1391 = vmatprep.mubr.bf16.mxu0 %v3417_v41  ;;  %2537 = vmatmul.mubr.msk.bf16.vlgmr.msra.gmra.mrb[0].mxu1 %vm277_vm0, %v3419_v46  ;;  %v369_v18 = vmul.f32 0.0034722222, %v336_v58  ;;  %v480_v9 = vmul.f32 %v3397_v23, %v415_v29  ;;  %2986 = vrsqrt.f32 %v382_v48  ;;  %v420_v14 = vmul.f32 %v2977_v21, %v3160_v44  ;;  %v2857_v22 = vld [vmem:[%s4093_s2 + $0x80] ss:$28 sps:$4 sm:$0xff]   ;;  %v2860_v29 = vld [vmem:[%s4093_s2 + $0xb0] ss:$28 sps:$4 sm:$0xff]  }
  0xc3   : > { %1586 = vmatpush1.bf16.msra.mxu1 %v2842_v20  ;;  %1392 = vmatmul.mubr.bf16.vlgmr.msra.gmra.mrb[0].mxu0 %v3421_v57  ;;  %v2981_v8 = vpop.eup %2980  ;;  %v368_v7 = vmul.f32 0.0034722222, %v331_v60  ;;  %v484_v52 = vmul.f32 %v3389_v45, %v419_v59  ;;  %v487_v3 = vmul.f32 %v3389_v45, %v422_v34  ;;  %v423_v24 = vmul.f32 %v2979_v40, %v3147_v37  ;;  %v2862_v37 = vld [vmem:[%s4093_s2 + $0xb4] ss:$28 sps:$4 sm:$0xff]  }
  0xc4   : > { %1812 = vmatpush1.bf16.msra.mxu0 %v2845_v54  ;;  %1587 = vmatprep.subr.bf16.mxu1 %v2850_v56  ;;  %v2983_v10 = vpop.eup %2982  ;;  %v418_v32 = vmul.f32 %v2977_v21, %v3154_v42  ;;  %v421_v20 = vmul.f32 %v2979_v40, %v3141_v35  ;;  %v3468_v44 = vpack.c.bf16 %v482_v43, %v479_v27  ;;  %v385_v28 = vadd.f32 1e-05, %v369_v18  ;;  %v2865_v35 = vld [vmem:[%s4093_s2 + $0xbc] ss:$28 sps:$4 sm:$0xff]   ;;  %v2871_v34 = vld [vmem:[%s4093_s2 + $0xf4] ss:$28 sps:$4 sm:$0xff]  }
  0xc5   : > { %1401 = vmatprep.mubr.bf16.mxu0 %v3429_v1  ;;  %1813 = vmatprep.subr.bf16.mxu0 %v2853_v13  ;;  %v3476_v33 = vpack.c.bf16 %v480_v9, %v477_v16  ;;  %v485_v42 = vmul.f32 %v3391_v53, %v420_v14  ;;  %v384_v21 = vadd.f32 1e-05, %v368_v7  ;;  %v3484_v40 = vpack.c.bf16 %v487_v3, %v484_v52  ;;  %v341_v13 = vpop.xlane.xlu0 %340  ;;  %v2866_v9 = vld [vmem:[%s4093_s2 + $0xe8] ss:$28 sps:$4 sm:$0xff]   ;;  %v2869_v7 = vld [vmem:[%s4093_s2 + $0xf0] ss:$28 sps:$4 sm:$0xff]  }
  0xc6   : > { %1514 = vmatprep.mubr.bf16.mxu1 %v3018_v11  ;;  %v488_v54 = vmul.f32 %v3391_v53, %v423_v24  ;;  %v425_v56 = vmul.f32 %v2981_v8, %v3192_v62  ;;  %v428_v15 = vmul.f32 %v2983_v10, %v3171_v50  ;;  %v483_v48 = vmul.f32 %v3397_v23, %v418_v32  ;;  %v2863_v62 = vld [vmem:[%s4093_s2 + $0xb8] ss:$28 sps:$4 sm:$0xff]   ;;  %v2868_v50 = vld [vmem:[%s4093_s2 + $0xec] ss:$28 sps:$4 sm:$0xff]  }
  0xc7   : > { %1588 = vmatpush1.bf16.msra.mxu1 %v2848_v0  ;;  %v486_v58 = vmul.f32 %v3397_v23, %v421_v20  ;;  %2988 = vrsqrt.f32 %v385_v28  ;;  %v371_v59 = vmul.f32 0.0034722222, %v346_v38  ;;  %v426_v60 = vmul.f32 %v2981_v8, %v3195_v63  ;;  %v2877_v3 = vld [vmem:[%s4093_s2 + $0x12c] ss:$28 sps:$4 sm:$0xff]  }
  0xc8   : > { %1814 = vmatpush1.bf16.msra.mxu0 %v2851_v12  ;;  %1589 = vmatprep.subr.bf16.mxu1 %v2856_v36  ;;  %2990 = vrsqrt.f32 %v384_v21  ;;  %v370_v0 = vmul.f32 0.0034722222, %v341_v13  ;;  %v3507_v12 = vpack.c.bf16 %v488_v54, %v485_v42  ;;  %v490_v36 = vmul.f32 %v3389_v45, %v425_v56  ;;  %v2883_v42 = vld [vmem:[%s4093_s2 + $0x164] ss:$28 sps:$4 sm:$0xff]  }
  0xc9   : > { %1815 = vmatprep.subr.bf16.mxu0 %v2859_v19  ;;  %v2985_v27 = vpop.eup %2984  ;;  %v493_v43 = vmul.f32 %v3389_v45, %v428_v15  ;;  %v429_v16 = vmul.f32 %v2983_v10, %v3177_v55  ;;  %v3515_v19 = vpack.c.bf16 %v486_v58, %v483_v48  ;;  %v424_v63 = vmul.f32 %v2981_v8, %v3189_v61  ;;  %v2874_v55 = vld [vmem:[%s4093_s2 + $0x124] ss:$28 sps:$4 sm:$0xff]   ;;  %v351_v20 = vpop.xlane.xlu0 %350  ;;  %v2878_v58 = vld [vmem:[%s4093_s2 + $0x158] ss:$28 sps:$4 sm:$0xff]  }
  0xca   : > { %2538 = vmatmul.mubr.msk.bf16.gmra.mrb[4].mxu1 %vm277_vm0, %v3468_v44  ;;  %v427_v14 = vmul.f32 %v2983_v10, %v3168_v49  ;;  %v387_v52 = vadd.f32 1e-05, %v371_v59  ;;  %v491_v61 = vmul.f32 %v3391_v53, %v426_v60  ;;  %v386_v8 = vadd.f32 1e-05, %v370_v0  ;;  %v356_v49 = vpop.xlane.xlu1 %355  ;;  %v2881_v59 = vld [vmem:[%s4093_s2 + $0x160] ss:$28 sps:$4 sm:$0xff]  }
  0xcb   : > { %1590 = vmatpush1.bf16.msra.mxu1 %v2854_v31  ;;  %1402 = vmatmul.mubr.bf16.gmra.mrb[4].mxu0 %v3476_v33  ;;  %v3531_v24 = vpack.c.bf16 %v493_v43, %v490_v36  ;;  %v494_v10 = vmul.f32 %v3391_v53, %v429_v16  ;;  %v434_v32 = vmul.f32 %v2985_v27, %v3206_v5  ;;  %v2880_v5 = vld [vmem:[%s4093_s2 + $0x15c] ss:$28 sps:$4 sm:$0xff]   ;;  %v372_v38 = vmul.f32 0.0034722222, %v351_v20  ;;  %v2884_v16 = vld [vmem:[%s4093_s2 + $0x190] ss:$28 sps:$4 sm:$0xff]  }
  0xcc   : > { %1816 = vmatpush1.bf16.msra.mxu0 %v2857_v22  ;;  %1591 = vmatprep.subr.bf16.mxu1 %v2862_v37  ;;  %v2987_v18 = vpop.eup %2986  ;;  %v2872_v22 = vld [vmem:[%s4093_s2 + $0x120] ss:$28 sps:$4 sm:$0xff]   ;;  %v489_v37 = vmul.f32 %v3397_v23, %v424_v63  ;;  %v492_v28 = vmul.f32 %v3397_v23, %v427_v14  ;;  %2992 = vrsqrt.f32 %v387_v52  ;;  %v2887_v63 = vld [vmem:[%s4093_s2 + $0x198] ss:$28 sps:$4 sm:$0xff]   ;;  %v3000_v20 = vld [vmem:[%s3068_s28 + $0x108] sm:$0xff] }
  0xcd   : > { %1817 = vmatprep.subr.bf16.mxu0 %v2865_v35  ;;  %1524 = vmatprep.mubr.bf16.mxu1 %v3018_v11  ;;  %v431_v31 = vmul.f32 %v2987_v18, %v3227_v26  ;;  %v2875_v26 = vld [vmem:[%s4093_s2 + $0x128] ss:$28 sps:$4 sm:$0xff]   ;;  %v373_v35 = vmul.f32 0.0034722222, %v356_v49  ;;  %2994 = vrsqrt.f32 %v386_v8  ;;  %v432_v21 = vmul.f32 %v2987_v18, %v3230_v30  ;;  %v2889_v60 = vld [vmem:[%s4093_s2 + $0x19c] ss:$28 sps:$4 sm:$0xff]  }
  0xce   : > { %1411 = vmatprep.mubr.bf16.mxu0 %v3484_v40  ;;  %v3554_v56 = vpack.c.bf16 %v494_v10, %v491_v61  ;;  %v499_v13 = vmul.f32 %v3389_v45, %v434_v32  ;;  %v430_v30 = vmul.f32 %v2987_v18, %v3224_v25  ;;  %v388_v0 = vadd.f32 1e-05, %v372_v38  ;;  %v4101_v61 = vld [vmem:[#allocation3_spill] sm:$0xff]  ;;  %v2890_v10 = vld [vmem:[%s4093_s2 + $0x1c8] ss:$28 sps:$4 sm:$0xff]  }
  0xcf   : > { %1592 = vmatpush1.bf16.msra.mxu1 %v2860_v29  ;;  %v496_v15 = vmul.f32 %v3389_v45, %v431_v31  ;;  %v435_v29 = vmul.f32 %v2985_v27, %v3215_v17  ;;  %v2886_v17 = vld [vmem:[%s4093_s2 + $0x194] ss:$28 sps:$4 sm:$0xff]   ;;  %v497_v25 = vmul.f32 %v3391_v53, %v432_v21  ;;  %v3001_v38 = vld [vmem:[%s3068_s28 + $0x140] sm:$0xff] }
  0xd0   : > { %1818 = vmatpush1.bf16.msra.mxu0 %v2863_v62  ;;  %1593 = vmatprep.subr.bf16.mxu1 %v2868_v50  ;;  %v3562_v62 = vpack.c.bf16 %v492_v28, %v489_v37  ;;  %v433_v50 = vmul.f32 %v2985_v27, %v3203_v4  ;;  %v495_v18 = vmul.f32 %v3397_v23, %v430_v30  ;;  %v2893_v37 = vld [vmem:[%s4093_s2 + $0x1d0] ss:$28 sps:$4 sm:$0xff]   ;;  %v2898_v28 = vld [vmem:[%s4093_s2 + $0x204] ss:$28 sps:$4 sm:$0xff]  }
  0xd1   : > { %1819 = vmatprep.subr.bf16.mxu0 %v2871_v34  ;;  %v2989_v54 = vpop.eup %2988  ;;  %v389_v34 = vadd.f32 1e-05, %v373_v35  ;;  %v3578_v4 = vpack.c.bf16 %v499_v13, %v496_v15  ;;  %v500_v27 = vmul.f32 %v3391_v53, %v435_v29  ;;  %v2896_v15 = vld [vmem:[%s4093_s2 + $0x200] ss:$28 sps:$4 sm:$0xff]   ;;  %v3002_v30 = vld [vmem:[%s3068_s28 + $0x130] sm:$0xff] }
  0xd2   : > { %2539 = vmatmul.mubr.msk.bf16.gmra.mrb[8].mxu1 %vm277_vm0, %v3507_v12  ;;  %v2991_v48 = vpop.eup %2990  ;;  %v440_v43 = vmul.f32 %v2989_v54, %v3239_v39  ;;  %v2892_v39 = vld [vmem:[%s4093_s2 + $0x1cc] ss:$28 sps:$4 sm:$0xff]   ;;  %v441_v14 = vmul.f32 %v2989_v54, %v3248_v47  ;;  %v4102_v47 = vld [vmem:[#allocation2_spill] sm:$0xff] }
  0xd3   : > { %1594 = vmatpush1.bf16.msra.mxu1 %v2866_v9  ;;  %1412 = vmatmul.mubr.bf16.gmra.mrb[8].mxu0 %v3515_v19  ;;  %v437_v36 = vmul.f32 %v2991_v48, %v3254_v51  ;;  %v498_v9 = vmul.f32 %v3397_v23, %v433_v50  ;;  %2996 = vrsqrt.f32 %v389_v34  ;;  %v2895_v51 = vld [vmem:[%s4093_s2 + $0x1d4] ss:$28 sps:$4 sm:$0xff]   ;;  %v438_v8 = vmul.f32 %v2991_v48, %v4101_v61 }
  0xd4   : > { %1820 = vmatpush1.bf16.msra.mxu0 %v2869_v7  ;;  %1595 = vmatprep.subr.bf16.mxu1 %v2874_v55  ;;  %2998 = vrsqrt.f32 %v388_v0  ;;  %v3601_v55 = vpack.c.bf16 %v500_v27, %v497_v25  ;;  %v436_v32 = vmul.f32 %v2991_v48, %v4102_v47  ;;  %v2899_v48 = vld [vmem:[%s4093_s2 + $0x208] ss:$28 sps:$4 sm:$0xff]  }
  0xd5   : > { %1821 = vmatprep.subr.bf16.mxu0 %v2877_v3  ;;  %1534 = vmatprep.mubr.bf16.mxu1 %v3018_v11  ;;  %v502_v52 = vmul.f32 %v3389_v45, %v437_v36  ;;  %v505_v3 = vmul.f32 %v3389_v45, %v440_v43  ;;  %v3609_v31 = vpack.c.bf16 %v498_v9, %v495_v18  ;;  %v2902_v36 = vld [vmem:[%s4093_s2 + $0x238] ss:$28 sps:$4 sm:$0xff]  }
  0xd6   : > { %1421 = vmatprep.mubr.bf16.mxu0 %v3531_v24  ;;  %v2993_v7 = vpop.eup %2992  ;;  %v501_v13 = vmul.f32 %v3397_v23, %v436_v32  ;;  %v3004_v9 = vld [vmem:[%s3068_s28 + $0x138] sm:$0xff] }
  0xd7   : > { %1596 = vmatpush1.bf16.msra.mxu1 %v2872_v22  ;;  %v2995_v49 = vpop.eup %2994  ;;  %v439_v22 = vmul.f32 %v3000_v20, %v2989_v54  ;;  %v3625_v35 = vpack.c.bf16 %v505_v3, %v502_v52  ;;  %v446_v54 = vmul.f32 %v3001_v38, %v2993_v7  ;;  %v2916_v20 = vld [vmem:[%s4093_s2 + $0x2ac] ss:$28 sps:$4 sm:$0xff]  }
  0xd8   : > { %1822 = vmatpush1.bf16.msra.mxu0 %v2875_v26  ;;  %1597 = vmatprep.subr.bf16.mxu1 %v2880_v5  ;;  %v2901_v26 = vld [vmem:[%s4093_s2 + $0x20c] ss:$28 sps:$4 sm:$0xff]   ;;  %v506_v5 = vmul.f32 %v3391_v53, %v441_v14  ;;  %v443_v21 = vmul.f32 %v2995_v49, %v3271_v6  ;;  %v2904_v6 = vld [vmem:[%s4093_s2 + $0x23c] ss:$28 sps:$4 sm:$0xff]   ;;  %v444_v50 = vmul.f32 %v3002_v30, %v2995_v49 }
  0xd9   : > { %1823 = vmatprep.subr.bf16.mxu0 %v2883_v42  ;;  %v503_v42 = vmul.f32 %v3391_v53, %v438_v8  ;;  %v504_v29 = vmul.f32 %v3397_v23, %v439_v22  ;;  %v511_v0 = vmul.f32 %v3389_v45, %v446_v54  ;;  %v2913_v14 = vld [vmem:[%s4093_s2 + $0x27c] ss:$28 sps:$4 sm:$0xff]   ;;  %v3005_v8 = vld [vmem:[%s3068_s28 + $0x170] sm:$0xff]  ;;  %v2914_v54 = vld [vmem:[%s4093_s2 + $0x2a8] ss:$28 sps:$4 sm:$0xff]  }
  0xda   : > { %2540 = vmatmul.mubr.msk.bf16.gmra.mrb[12].mxu1 %vm277_vm0, %v3554_v56  ;;  %v508_v25 = vmul.f32 %v3389_v45, %v443_v21  ;;  %v509_v52 = vmul.f32 %v3391_v53, %v444_v50  ;;  %v3007_v21 = vld [vmem:[%s3068_s28 + $0x178] sm:$0xff]  ;;  %v2925_v30 = vld [vmem:[%s4093_s2 + $0x2ec] ss:$28 sps:$4 sm:$0xff]  }
  0xdb   : > { %1598 = vmatpush1.bf16.msra.mxu1 %v2878_v58  ;;  %1422 = vmatmul.mubr.bf16.gmra.mrb[12].mxu0 %v3562_v62  ;;  %v2907_v58 = vld [vmem:[%s4093_s2 + $0x244] ss:$28 sps:$4 sm:$0xff]   ;;  %v3656_v43 = vpack.c.bf16 %v504_v29, %v501_v13  ;;  %v3008_v13 = vld [vmem:[%s3068_s28 + $0x150] sm:$0xff] }
  0xdc   : > { %1824 = vmatpush1.bf16.msra.mxu0 %v2881_v59  ;;  %1599 = vmatprep.subr.bf16.mxu1 %v2886_v17  ;;  %v4103_v59 = vld [vmem:[#allocation4_spill] sm:$0xff] }
  0xdd   : > { %1825 = vmatprep.subr.bf16.mxu0 %v2889_v60  ;;  %1544 = vmatprep.mubr.bf16.mxu1 %v3018_v11  ;;  %v447_v17 = vmul.f32 %v2993_v7, %v4103_v59  ;;  %v2997_v34 = vpop.eup %2996  ;;  %v3649_v60 = vpack.c.bf16 %v506_v5, %v503_v42  ;;  %v3006_v5 = vld [vmem:[%s3068_s28 + $0x160] sm:$0xff] }
  0xde   : > { %1431 = vmatprep.mubr.bf16.mxu0 %v3578_v4  ;;  %v2999_v27 = vpop.eup %2998  ;;  %v453_v38 = vmul.f32 %v3007_v21, %v2997_v34  ;;  %v2957_v21 = vld [vmem:[%s4093_s2 + $0xc0] ss:$28 sps:$4 sm:$0xff]  }
  0xdf   : > { %1600 = vmatpush1.bf16.msra.mxu1 %v2884_v16  ;;  %v3003_v16 = vld [vmem:[%s3068_s28 + $0x120] sm:$0xff]  ;;  %v512_v3 = vmul.f32 %v3391_v53, %v447_v17  ;;  %v449_v61 = vmul.f32 %v2999_v27, %v3301_v2  ;;  %v2911_v2 = vld [vmem:[%s4093_s2 + $0x278] ss:$28 sps:$4 sm:$0xff]   ;;  %v450_v42 = vmul.f32 %v3006_v5, %v2999_v27  ;;  %v448_v29 = vmul.f32 %v3008_v13, %v2999_v27  ;;  %v2960_v13 = vld [vmem:[%s4093_s2 + $0x2f0] ss:$28 sps:$4 sm:$0xff]  }
  0xe0   : > { %1826 = vmatpush1.bf16.msra.mxu0 %v2887_v63  ;;  %1601 = vmatprep.subr.bf16.mxu1 %v2892_v39  ;;  %v442_v18 = vmul.f32 %v3003_v16, %v2995_v49  ;;  %v445_v63 = vmul.f32 %v3004_v9, %v2993_v7  ;;  %v2905_v39 = vld [vmem:[%s4093_s2 + $0x240] ss:$28 sps:$4 sm:$0xff]   ;;  %v3673_v7 = vpack.c.bf16 %v511_v0, %v508_v25  ;;  %v2923_v27 = vld [vmem:[%s4093_s2 + $0x2e8] ss:$28 sps:$4 sm:$0xff]   ;;  %v2926_v16 = vld [vmem:[%s4093_s2 + $0x318] ss:$28 sps:$4 sm:$0xff]  }
  0xe1   : > { %1827 = vmatprep.subr.bf16.mxu0 %v2895_v51  ;;  %v2910_v51 = vld [vmem:[%s4093_s2 + $0x274] ss:$28 sps:$4 sm:$0xff]   ;;  %v452_v49 = vmul.f32 %v3005_v8, %v2997_v34  ;;  %v3690_v22 = vpack.c.bf16 %v512_v3, %v509_v52  ;;  %v515_v59 = vmul.f32 %v3391_v53, %v450_v42  ;;  %v518_v17 = vmul.f32 %v3391_v53, %v453_v38  ;;  %v2928_v53 = vld [vmem:[%s4093_s2 + $0x31c] ss:$28 sps:$4 sm:$0xff]   ;;  %v2940_v52 = vld [vmem:[%s4093_s2 + $0x38c] ss:$28 sps:$4 sm:$0xff]  }
  0xe2   : > { %2541 = vmatmul.mubr.msk.bf16.gmra.mrb[16].mxu1 %vm277_vm0, %v3601_v55  ;;  %v507_v47 = vmul.f32 %v3397_v23, %v442_v18  ;;  %v510_v32 = vmul.f32 %v3397_v23, %v445_v63  ;;  %v513_v25 = vmul.f32 %v3397_v23, %v448_v29  ;;  %v2929_v9 = vld [vmem:[%s4093_s2 + $0x320] ss:$28 sps:$4 sm:$0xff]   ;;  %v2934_v63 = vld [vmem:[%s4093_s2 + $0x354] ss:$28 sps:$4 sm:$0xff]   ;;  %v2955_v5 = vld [vmem:[%s4093_s2 + $0x88] ss:$28 sps:$4 sm:$0xff]  }
  0xe3   : > { %1602 = vmatpush1.bf16.msra.mxu1 %v2890_v10  ;;  %1432 = vmatmul.mubr.bf16.gmra.mrb[16].mxu0 %v3609_v31  ;;  %v2908_v10 = vld [vmem:[%s4093_s2 + $0x270] ss:$28 sps:$4 sm:$0xff]   ;;  %v2943_v8 = vld [vmem:[%s4093_s2 + $0x3c4] ss:$28 sps:$4 sm:$0xff]   ;;  %v2958_v38 = vld [vmem:[%s4093_s2 + $0x2b8] ss:$28 sps:$4 sm:$0xff]  }
  0xe4   : > { %1828 = vmatpush1.bf16.msra.mxu0 %v2893_v37  ;;  %1603 = vmatprep.subr.bf16.mxu1 %v2898_v28  ;;  %v2919_v37 = vld [vmem:[%s4093_s2 + $0x2b4] ss:$28 sps:$4 sm:$0xff]   ;;  %v514_v28 = vmul.f32 %v3389_v45, %v449_v61  ;;  %v2938_v61 = vld [vmem:[%s4093_s2 + $0x388] ss:$28 sps:$4 sm:$0xff]   ;;  %v2956_v42 = vld [vmem:[%s4093_s2 + $0x280] ss:$28 sps:$4 sm:$0xff]  }
  0xe5   : > { %1829 = vmatprep.subr.bf16.mxu0 %v2901_v26  ;;  %1554 = vmatprep.mubr.bf16.mxu1 %v3018_v11  ;;  %v517_v26 = vmul.f32 %v3389_v45, %v452_v49  ;;  %v2917_v45 = vld [vmem:[%s4093_s2 + $0x2b0] ss:$28 sps:$4 sm:$0xff]  }
  0xe6   : > { %1441 = vmatprep.mubr.bf16.mxu0 %v3625_v35  ;;  %v2946_v3 = vld [vmem:[%s4093_s2 + $0x394] ss:$28 sps:$4 sm:$0xff]  }
  0xe7   : > { %1604 = vmatpush1.bf16.msra.mxu1 %v2896_v15  ;;  %v3703_v15 = vpack.c.bf16 %v510_v32, %v507_v47  ;;  %v3718_v50 = vpack.c.bf16 %v517_v26, %v514_v28  ;;  %v2944_v49 = vld [vmem:[%s4093_s2 + $0x390] ss:$28 sps:$4 sm:$0xff]   ;;  %v2941_v47 = vld [vmem:[%s4093_s2 + $0x3c0] ss:$28 sps:$4 sm:$0xff]   ;;  %v2950_v32 = vld [vmem:[%s4093_s2 + $0x1d8] ss:$28 sps:$4 sm:$0xff]  }
  0xe8   : > { %1830 = vmatpush1.bf16.msra.mxu0 %v2899_v48  ;;  %1605 = vmatprep.subr.bf16.mxu1 %v2904_v6  ;;  %v3009_v48 = vld [vmem:[%s3068_s28 + $0x168] sm:$0xff]  ;;  %s3937_s28 = scalar_lea.vmem %s4094_s3, %s2778_s30 }
  0xe9   : > { %1831 = vmatprep.subr.bf16.mxu0 %v2907_v58  ;;  %v451_v6 = vmul.f32 %v3009_v48, %v2997_v34  ;;  %v2922_v58 = vld [vmem:[%s4093_s2 + $0x2e4] ss:$28 sps:$4 sm:$0xff]   ;;  %v2953_v28 = vld [vmem:[%s4093_s2 + $0x50] ss:$28 sps:$4 sm:$0xff]  }
  0xea   : > { %2542 = vmatmul.mubr.msk.bf16.gmra.mrb[20].mxu1 %vm277_vm0, %v3649_v60  ;;  %v2920_v34 = vld [vmem:[%s4093_s2 + $0x2e0] ss:$28 sps:$4 sm:$0xff]   ;;  %v2954_v26 = vld [vmem:[%s4093_s2 + $0x248] ss:$28 sps:$4 sm:$0xff]   ;;  %v2961_v29 = vld [vmem:[%s4093_s2 + $0x130] ss:$28 sps:$4 sm:$0xff]  }
  0xeb   : > { %1606 = vmatpush1.bf16.msra.mxu1 %v2902_v36  ;;  %1442 = vmatmul.mubr.bf16.gmra.mrb[20].mxu0 %v3656_v43  ;;  %v516_v0 = vmul.f32 %v3397_v23, %v451_v6  ;;  %v2931_v36 = vld [vmem:[%s4093_s2 + $0x324] ss:$28 sps:$4 sm:$0xff]   ;;  %v3739_v23 = vpack.c.bf16 %v518_v17, %v515_v59  ;;  %v2967_v59 = vld [vmem:[%s4093_s2 + $0x3d0] ss:$28 sps:$4 sm:$0xff]  }
  0xec   : > { %1832 = vmatpush1.bf16.msra.mxu0 %v2905_v39  ;;  %1607 = vmatprep.subr.bf16.mxu1 %v2910_v51  ;;  %v2937_v39 = vld [vmem:[%s4093_s2 + $0x35c] ss:$28 sps:$4 sm:$0xff]   ;;  %v2932_v51 = vld [vmem:[%s4093_s2 + $0x350] ss:$28 sps:$4 sm:$0xff]   ;;  %v2962_v48 = vld [vmem:[%s4093_s2 + $0x328] ss:$28 sps:$4 sm:$0xff]  }
  0xed   : > { %1833 = vmatprep.subr.bf16.mxu0 %v2913_v14  ;;  %1564 = vmatprep.mubr.bf16.mxu1 %v3018_v11  ;;  %v3744_v18 = vpack.c.bf16 %v516_v0, %v513_v25  ;;  %v2935_v14 = vld [vmem:[%s4093_s2 + $0x358] ss:$28 sps:$4 sm:$0xff]   ;;  %v2963_v6 = vld [vmem:[%s4093_s2 + $0x168] ss:$28 sps:$4 sm:$0xff]  }
  0xee   : > { %1451 = vmatprep.mubr.bf16.mxu0 %v3673_v7 }
  0xef   : > { %1608 = vmatpush1.bf16.msra.mxu1 %v2908_v10  ;;  %v2949_v10 = vld [vmem:[%s4093_s2 + $0x3cc] ss:$28 sps:$4 sm:$0xff]  }
  0xf0   : > { %1834 = vmatpush1.bf16.msra.mxu0 %v2911_v2  ;;  %1609 = vmatprep.subr.bf16.mxu1 %v2916_v20  ;;  %v2947_v2 = vld [vmem:[%s4093_s2 + $0x3c8] ss:$28 sps:$4 sm:$0xff]   ;;  %v2951_v20 = vld [vmem:[%s4093_s2 + $0x18] ss:$28 sps:$4 sm:$0xff]  }
  0xf1   : > { %1835 = vmatprep.subr.bf16.mxu0 %v2919_v37  ;;  %v2952_v37 = vld [vmem:[%s4093_s2 + $0x210] ss:$28 sps:$4 sm:$0xff]  }
  0xf2   : > { %2543 = vmatmul.mubr.msk.bf16.gmra.mrb[24].mxu1 %vm277_vm0, %v3690_v22 }
  0xf3   : > { %1610 = vmatpush1.bf16.msra.mxu1 %v2914_v54  ;;  %1452 = vmatmul.mubr.bf16.gmra.mrb[24].mxu0 %v3703_v15  ;;  %v2959_v54 = vld [vmem:[%s4093_s2 + $0xf8] ss:$28 sps:$4 sm:$0xff]  }
  0xf4   : > { %1836 = vmatpush1.bf16.msra.mxu0 %v2917_v45  ;;  %1611 = vmatprep.subr.bf16.mxu1 %v2922_v58  ;;  %v2964_v45 = vld [vmem:[%s4093_s2 + $0x360] ss:$28 sps:$4 sm:$0xff]  }
  0xf5   : > { %1837 = vmatprep.subr.bf16.mxu0 %v2925_v30  ;;  %1574 = vmatprep.mubr.bf16.mxu1 %v3018_v11  ;;  %v2965_v58 = vld [vmem:[%s4093_s2 + $0x1a0] ss:$28 sps:$4 sm:$0xff]   ;;  %v2966_v30 = vld [vmem:[%s4093_s2 + $0x398] ss:$28 sps:$4 sm:$0xff]  }
  0xf6   : > { %1461 = vmatprep.mubr.bf16.mxu0 %v3718_v50 }
  0xf7   : > { %1612 = vmatpush1.bf16.msra.mxu1 %v2920_v34 }
  0xf8   : > { %1838 = vmatpush1.bf16.msra.mxu0 %v2923_v27  ;;  %1613 = vmatprep.subr.bf16.mxu1 %v2928_v53 }
  0xf9   : > { %1839 = vmatprep.subr.bf16.mxu0 %v2931_v36 }
  0xfa   : > { %2544 = vmatmul.mubr.msk.bf16.gmra.mrb[28].mxu1 %vm277_vm0, %v3739_v23 }
  0xfb   : > { %1614 = vmatpush1.bf16.msra.mxu1 %v2926_v16  ;;  %1462 = vmatmul.mubr.bf16.gmra.mrb[28].mxu0 %v3744_v18 }
  0xfc   : > { %1617 = vmatprep.mubr.bf16.mxu1 %v3417_v41  ;;  %1840 = vmatpush1.bf16.msra.mxu0 %v2929_v9 }
  0xfd   : > { %1843 = vmatprep.mubr.bf16.mxu0 %v3417_v41  ;;  %1615 = vmatprep.subr.bf16.mxu1 %v2934_v63 }
  0xfe   : > { %1841 = vmatprep.subr.bf16.mxu0 %v2937_v39 }
  0xff   : > { %1616 = vmatpush1.bf16.msra.mxu1 %v2932_v51 }
 0x100   : > { %1842 = vmatpush1.bf16.msra.mxu0 %v2935_v14  ;;  %1698 = vmatprep.subr.bf16.mxu1 %v2940_v52 }
 0x101   : > { %1924 = vmatprep.subr.bf16.mxu0 %v2946_v3 }
 0x102   : > { %1618 = vmatmul.mubr.bf16.vlgmr.msra.gmra.mrb[32].mxu1 %v3421_v57 }
 0x103   : > { %1699 = vmatpush1.bf16.msra.mxu1 %v2938_v61  ;;  %1627 = vmatprep.mubr.bf16.mxu1 %v3429_v1 }
 0x104   : > { %1844 = vmatmul.mubr.bf16.vlgmr.msra.gmra.mrb[32].mxu0 %v3421_v57  ;;  %1700 = vmatprep.subr.bf16.mxu1 %v2943_v8 }
 0x105   : > { %1853 = vmatprep.mubr.bf16.mxu0 %v3429_v1  ;;  %1925 = vmatpush1.bf16.msra.mxu0 %v2944_v49 }
 0x106   : > { %1926 = vmatprep.subr.bf16.mxu0 %v2949_v10 }
 0x107   : > { %1701 = vmatpush1.bf16.msra.mxu1 %v2941_v47 }
 0x108   : > { %2665 = vmatprep.subr.bf16.mxu1 %v2950_v32 }
 0x109   : > { %1927 = vmatpush1.bf16.msra.mxu0 %v2947_v2 }
 0x10a   : > { %1628 = vmatmul.mubr.bf16.gmra.mrb[36].mxu1 %v3476_v33  ;;  %2571 = vmatprep.subr.bf16.mxu0 %v2950_v32 }
 0x10b   : > { %1637 = vmatprep.mubr.bf16.mxu1 %v3484_v40 }
 0x10c   : > { %1854 = vmatmul.mubr.bf16.gmra.mrb[36].mxu0 %v3476_v33 }
 0x10d   : > { %1863 = vmatprep.mubr.bf16.mxu0 %v3484_v40 }
 0x112   : > { %1638 = vmatmul.mubr.bf16.gmra.mrb[40].mxu1 %v3515_v19 }
 0x113   : > { %1647 = vmatprep.mubr.bf16.mxu1 %v3531_v24 }
 0x114   : > { %1864 = vmatmul.mubr.bf16.gmra.mrb[40].mxu0 %v3515_v19 }
 0x115   : > { %1873 = vmatprep.mubr.bf16.mxu0 %v3531_v24 }
 0x11a   : > { %1648 = vmatmul.mubr.bf16.gmra.mrb[44].mxu1 %v3562_v62 }
 0x11b   : > { %1657 = vmatprep.mubr.bf16.mxu1 %v3578_v4 }
 0x11c   : > { %1874 = vmatmul.mubr.bf16.gmra.mrb[44].mxu0 %v3562_v62 }
 0x11d   : > { %1883 = vmatprep.mubr.bf16.mxu0 %v3578_v4 }
 0x122   : > { %1658 = vmatmul.mubr.bf16.gmra.mrb[48].mxu1 %v3609_v31 }
 0x123   : > { %1667 = vmatprep.mubr.bf16.mxu1 %v3625_v35 }
 0x124   : > { %1884 = vmatmul.mubr.bf16.gmra.mrb[48].mxu0 %v3609_v31 }
 0x125   : > { %1893 = vmatprep.mubr.bf16.mxu0 %v3625_v35 }
 0x12a   : > { %1668 = vmatmul.mubr.bf16.gmra.mrb[52].mxu1 %v3656_v43 }
 0x12b   : > { %1677 = vmatprep.mubr.bf16.mxu1 %v3673_v7 }
 0x12c   : > { %1894 = vmatmul.mubr.bf16.gmra.mrb[52].mxu0 %v3656_v43 }
 0x12d   : > { %1903 = vmatprep.mubr.bf16.mxu0 %v3673_v7 }
 0x132   : > { %1678 = vmatmul.mubr.bf16.gmra.mrb[56].mxu1 %v3703_v15 }
 0x133   : > { %1687 = vmatprep.mubr.bf16.mxu1 %v3718_v50 }
 0x134   : > { %1904 = vmatmul.mubr.bf16.gmra.mrb[56].mxu0 %v3703_v15 }
 0x135   : > { %1913 = vmatprep.mubr.bf16.mxu0 %v3718_v50 }
 0x13a   : > { %1688 = vmatmul.mubr.bf16.gmra.mrb[60].mxu1 %v3744_v18 }
 0x13b   : > { %1730 = vmatprep.mubr.bf16.mxu1 %v3018_v11 }
 0x13c   : > { %1914 = vmatmul.mubr.bf16.gmra.mrb[60].mxu0 %v3744_v18 }
 0x13d   : > { %1956 = vmatprep.mubr.bf16.mxu0 %v3018_v11 }
 0x142   : > { %2545 = vmatmul.mubr.msk.bf16.vlgmr.msra.gmra.mrb[32].mxu1 %vm277_vm0, %v3419_v46 }
 0x143   : > { %2673 = vmatpush3.bf16.msra.mxu1 %v2951_v20  ;;  %1740 = vmatprep.mubr.bf16.mxu1 %v3018_v11 }
 0x144   : > { %2553 = vmatmul.mubr.msk.bf16.vlgmr.msra.gmra.mrb[32].mxu0 %vm277_vm0, %v3419_v46  ;;  %2666 = vmatprep.subr.bf16.mxu1 %v2952_v37 }
 0x145   : > { %1966 = vmatprep.mubr.bf16.mxu0 %v3018_v11  ;;  %2572 = vmatpush3.bf16.msra.mxu0 %v2951_v20 }
 0x146   : > { %2573 = vmatprep.subr.bf16.mxu0 %v2952_v37 }
 0x147   : > { %2674 = vmatpush3.bf16.msra.mxu1 %v2953_v28 }
 0x148   : > { %2667 = vmatprep.subr.bf16.mxu1 %v2954_v26 }
 0x149   : > { %2574 = vmatpush3.bf16.msra.mxu0 %v2953_v28 }
 0x14a   : > { %2546 = vmatmul.mubr.msk.bf16.gmra.mrb[36].mxu1 %vm277_vm0, %v3468_v44  ;;  %2575 = vmatprep.subr.bf16.mxu0 %v2954_v26 }
 0x14b   : > { %1750 = vmatprep.mubr.bf16.mxu1 %v3018_v11  ;;  %2675 = vmatpush3.bf16.msra.mxu1 %v2955_v5 }
 0x14c   : > { %2554 = vmatmul.mubr.msk.bf16.gmra.mrb[36].mxu0 %vm277_vm0, %v3468_v44  ;;  %2668 = vmatprep.subr.bf16.mxu1 %v2956_v42 }
 0x14d   : > { %1976 = vmatprep.mubr.bf16.mxu0 %v3018_v11  ;;  %2576 = vmatpush3.bf16.msra.mxu0 %v2955_v5 }
 0x14e   : > { %2577 = vmatprep.subr.bf16.mxu0 %v2956_v42 }
 0x14f   : > { %2676 = vmatpush3.bf16.msra.mxu1 %v2957_v21 }
 0x150   : > { %2669 = vmatprep.subr.bf16.mxu1 %v2958_v38 }
 0x151   : > { %2578 = vmatpush3.bf16.msra.mxu0 %v2957_v21 }
 0x152   : > { %2547 = vmatmul.mubr.msk.bf16.gmra.mrb[40].mxu1 %vm277_vm0, %v3507_v12  ;;  %2579 = vmatprep.subr.bf16.mxu0 %v2958_v38 }
 0x153   : > { %1760 = vmatprep.mubr.bf16.mxu1 %v3018_v11  ;;  %2677 = vmatpush3.bf16.msra.mxu1 %v2959_v54 }
 0x154   : > { %2555 = vmatmul.mubr.msk.bf16.gmra.mrb[40].mxu0 %vm277_vm0, %v3507_v12  ;;  %2670 = vmatprep.subr.bf16.mxu1 %v2960_v13 }
 0x155   : > { %1986 = vmatprep.mubr.bf16.mxu0 %v3018_v11  ;;  %2580 = vmatpush3.bf16.msra.mxu0 %v2959_v54 }
 0x156   : > { %2581 = vmatprep.subr.bf16.mxu0 %v2960_v13 }
 0x157   : > { %2678 = vmatpush3.bf16.msra.mxu1 %v2961_v29 }
 0x158   : > { %2671 = vmatprep.subr.bf16.mxu1 %v2962_v48 }
 0x159   : > { %2582 = vmatpush3.bf16.msra.mxu0 %v2961_v29 }
 0x15a   : > { %2548 = vmatmul.mubr.msk.bf16.gmra.mrb[44].mxu1 %vm277_vm0, %v3554_v56  ;;  %2583 = vmatprep.subr.bf16.mxu0 %v2962_v48 }
 0x15b   : > { %1770 = vmatprep.mubr.bf16.mxu1 %v3018_v11  ;;  %2679 = vmatpush3.bf16.msra.mxu1 %v2963_v6 }
 0x15c   : > { %2556 = vmatmul.mubr.msk.bf16.gmra.mrb[44].mxu0 %vm277_vm0, %v3554_v56  ;;  %2672 = vmatprep.subr.bf16.mxu1 %v2964_v45 }
 0x15d   : > { %1996 = vmatprep.mubr.bf16.mxu0 %v3018_v11  ;;  %2584 = vmatpush3.bf16.msra.mxu0 %v2963_v6 }
 0x15e   : > { %2585 = vmatprep.subr.bf16.mxu0 %v2964_v45 }
 0x15f   : > { %2680 = vmatpush3.bf16.msra.mxu1 %v2965_v58 }
 0x160   : > { %2645 = vmatprep.subr.bf16.mxu1 %v2966_v30 }
 0x161   : > { %2586 = vmatpush3.bf16.msra.mxu0 %v2965_v58 }
 0x162   : > { %2549 = vmatmul.mubr.msk.bf16.gmra.mrb[48].mxu1 %vm277_vm0, %v3601_v55 }
 0x163   : > { %1780 = vmatprep.mubr.bf16.mxu1 %v3018_v11 }
 0x164   : > { %2557 = vmatmul.mubr.msk.bf16.gmra.mrb[48].mxu0 %vm277_vm0, %v3601_v55 }
 0x165   : > { %2006 = vmatprep.mubr.bf16.mxu0 %v3018_v11 }
 0x16a   : > { %2550 = vmatmul.mubr.msk.bf16.gmra.mrb[52].mxu1 %vm277_vm0, %v3649_v60 }
 0x16b   : > { %1790 = vmatprep.mubr.bf16.mxu1 %v3018_v11 }
 0x16c   : > { %2558 = vmatmul.mubr.msk.bf16.gmra.mrb[52].mxu0 %vm277_vm0, %v3649_v60 }
 0x16d   : > { %2016 = vmatprep.mubr.bf16.mxu0 %v3018_v11 }
 0x172   : > { %2551 = vmatmul.mubr.msk.bf16.gmra.mrb[56].mxu1 %vm277_vm0, %v3690_v22 }
 0x173   : > { %1800 = vmatprep.mubr.bf16.mxu1 %v3018_v11 }
 0x174   : > { %2559 = vmatmul.mubr.msk.bf16.gmra.mrb[56].mxu0 %vm277_vm0, %v3690_v22 }
 0x175   : > { %2026 = vmatprep.mubr.bf16.mxu0 %v3018_v11 }
 0x17a   : > { %2552 = vmatmul.mubr.msk.bf16.gmra.mrb[60].mxu1 %vm277_vm0, %v3739_v23 }
 0x17b   : > { %2085 = vmatprep.mubr.bf16.mxu1 %v3484_v40 }
 0x17c   : > { %2560 = vmatmul.mubr.msk.bf16.gmra.mrb[60].mxu0 %vm277_vm0, %v3739_v23 }
 0x17d   : > { %2069 = vmatprep.mubr.bf16.mxu0 %v3417_v41 }
 0x182   : > { %2086 = vmatmul.mubr.bf16.vlgmr.msra.gmra.mrb[64].mxu1 %v3515_v19 }
 0x183   : > { %2646 = vmatpush3.bf16.msra.mxu1 %v2966_v30  ;;  %2093 = vmatprep.mubr.bf16.mxu1 %v3531_v24 }
 0x184   : > { %2070 = vmatmul.mubr.bf16.vlgmr.msra.gmra.mrb[64].mxu0 %v3421_v57  ;;  %2647 = vmatprep.subr.bf16.mxu1 %v2967_v59 }
 0x185   : > { %2077 = vmatprep.mubr.bf16.mxu0 %v3429_v1 }
 0x187   : > { %2648 = vmatpush3.bf16.msra.mxu1 %v2967_v59 }
 0x18a   : > { %2094 = vmatmul.mubr.bf16.gmra.mrb[68].mxu1 %v3562_v62 }
 0x18b   : > { %2101 = vmatprep.mubr.bf16.mxu1 %v3578_v4 }
 0x18c   : > { %2078 = vmatmul.mubr.bf16.gmra.mrb[68].mxu0 %v3476_v33 }
 0x192   : > { %2102 = vmatmul.mubr.bf16.gmra.mrb[72].mxu1 %v3609_v31 }
 0x193   : > { %2109 = vmatprep.mubr.bf16.mxu1 %v3625_v35 }
 0x195   : > { %v1506_v11 = vpop.f32.mrb[0].mxu1 }
 0x196   : > { %v1393_v41 = vpop.f32.mrb[0].mxu0  ;;  %v1508_v57 = vpop.f32.mrb[1].mxu1 }
 0x197   : > { %v1507_v1 = vadd.f32 %v1506_v11, %v1393_v41  ;;  %v1395_v40 = vpop.f32.mrb[1].mxu0  ;;  %v1510_v33 = vpop.f32.mrb[2].mxu1 }
 0x198   : > { %v1509_v19 = vadd.f32 %v1508_v57, %v1395_v40  ;;  %v1397_v24 = vpop.f32.mrb[2].mxu0  ;;  %v1512_v62 = vpop.f32.mrb[3].mxu1 }
 0x199   : > { %2231 = vst [vmem:[%s3937_s28] sm:$0xff] %v1507_v1  ;;  %v1511_v4 = vadd.f32 %v1510_v33, %v1397_v24  ;;  %v1399_v31 = vpop.f32.mrb[3].mxu0 }
 0x19a   : > { %2232 = vst [vmem:[%s3937_s28 + $0x8] sm:$0xff] %v1509_v19  ;;  %v1513_v35 = vadd.f32 %v1512_v62, %v1399_v31  ;;  %2110 = vmatmul.mubr.bf16.gmra.mrb[76].mxu1 %v3656_v43 }
 0x19b   : > { %2239 = vst [vmem:[%s3937_s28 + $0x38] sm:$0xff] %v1511_v4  ;;  %2117 = vmatprep.mubr.bf16.mxu1 %v3673_v7 }
 0x19c   : > { %2240 = vst [vmem:[%s3937_s28 + $0x40] sm:$0xff] %v1513_v35 }
 0x19d   : > { %v1516_v17 = vpop.f32.mrb[4].mxu1 }
 0x19e   : > { %v1403_v34 = vpop.f32.mrb[4].mxu0  ;;  %v1518_v25 = vpop.f32.mrb[5].mxu1 }
 0x19f   : > { %v1517_v0 = vadd.f32 %v1516_v17, %v1403_v34  ;;  %v1405_v27 = vpop.f32.mrb[5].mxu0  ;;  %v1520_v53 = vpop.f32.mrb[6].mxu1 }
 0x1a0   : > { %v1519_v36 = vadd.f32 %v1518_v25, %v1405_v27  ;;  %v1407_v16 = vpop.f32.mrb[6].mxu0  ;;  %v1522_v9 = vpop.f32.mrb[7].mxu1 }
 0x1a1   : > { %2246 = vst [vmem:[%s3937_s28 + $0x70] sm:$0xff] %v1517_v0  ;;  %v1521_v63 = vadd.f32 %v1520_v53, %v1407_v16  ;;  %v1409_v39 = vpop.f32.mrb[7].mxu0 }
 0x1a2   : > { %2247 = vst [vmem:[%s3937_s28 + $0x78] sm:$0xff] %v1519_v36  ;;  %v1523_v43 = vadd.f32 %v1522_v9, %v1409_v39  ;;  %2118 = vmatmul.mubr.bf16.gmra.mrb[80].mxu1 %v3703_v15 }
 0x1a3   : > { %2253 = vst [vmem:[%s3937_s28 + $0xa8] sm:$0xff] %v1521_v63  ;;  %2125 = vmatprep.mubr.bf16.mxu1 %v3718_v50 }
 0x1a4   : > { %2254 = vst [vmem:[%s3937_s28 + $0xb0] sm:$0xff] %v1523_v43 }
 0x1a5   : > { %v1526_v7 = vpop.f32.mrb[8].mxu1 }
 0x1a6   : > { %v1413_v51 = vpop.f32.mrb[8].mxu0  ;;  %v1528_v14 = vpop.f32.mrb[9].mxu1 }
 0x1a7   : > { %v1527_v52 = vadd.f32 %v1526_v7, %v1413_v51  ;;  %v1415_v3 = vpop.f32.mrb[9].mxu0  ;;  %v1530_v61 = vpop.f32.mrb[10].mxu1 }
 0x1a8   : > { %v1529_v8 = vadd.f32 %v1528_v14, %v1415_v3  ;;  %v1417_v49 = vpop.f32.mrb[10].mxu0  ;;  %v1532_v10 = vpop.f32.mrb[11].mxu1 }
 0x1a9   : > { %2260 = vst [vmem:[%s3937_s28 + $0xe0] sm:$0xff] %v1527_v52  ;;  %v1531_v47 = vadd.f32 %v1530_v61, %v1417_v49  ;;  %v1419_v32 = vpop.f32.mrb[11].mxu0 }
 0x1aa   : > { %2261 = vst [vmem:[%s3937_s28 + $0xe8] sm:$0xff] %v1529_v8  ;;  %v1533_v15 = vadd.f32 %v1532_v10, %v1419_v32  ;;  %2126 = vmatmul.mubr.bf16.gmra.mrb[84].mxu1 %v3744_v18 }
 0x1ab   : > { %2267 = vst [vmem:[%s3937_s28 + $0x118] sm:$0xff] %v1531_v47  ;;  %2649 = vmatprep.mubr.msk.bf16.mxu1 %vm277_vm0, %v3419_v46 }
 0x1ac   : > { %2268 = vst [vmem:[%s3937_s28 + $0x120] sm:$0xff] %v1533_v15 }
 0x1ad   : > { %v1536_v50 = vpop.f32.mrb[12].mxu1 }
 0x1ae   : > { %v1423_v2 = vpop.f32.mrb[12].mxu0  ;;  %v1538_v20 = vpop.f32.mrb[13].mxu1 }
 0x1af   : > { %v1537_v37 = vadd.f32 %v1536_v50, %v1423_v2  ;;  %v1425_v28 = vpop.f32.mrb[13].mxu0  ;;  %v1540_v26 = vpop.f32.mrb[14].mxu1 }
 0x1b0   : > { %v1539_v5 = vadd.f32 %v1538_v20, %v1425_v28  ;;  %v1427_v42 = vpop.f32.mrb[14].mxu0  ;;  %v1542_v21 = vpop.f32.mrb[15].mxu1 }
 0x1b1   : > { %2274 = vst [vmem:[%s3937_s28 + $0x150] sm:$0xff] %v1537_v37  ;;  %v1541_v38 = vadd.f32 %v1540_v26, %v1427_v42  ;;  %v1429_v18 = vpop.f32.mrb[15].mxu0 }
 0x1b2   : > { %2275 = vst [vmem:[%s3937_s28 + $0x158] sm:$0xff] %v1539_v5  ;;  %v1543_v54 = vadd.f32 %v1542_v21, %v1429_v18  ;;  %2650 = vmatmul.mubr.msk.bf16.vlgmr.msra.gmra.mrb[88].mxu1 %vm277_vm0, %v3468_v44 }
 0x1b3   : > { %2281 = vst [vmem:[%s3937_s28 + $0x188] sm:$0xff] %v1541_v38  ;;  %2653 = vmatprep.mubr.msk.bf16.mxu1 %vm277_vm0, %v3507_v12 }
 0x1b4   : > { %2282 = vst [vmem:[%s3937_s28 + $0x190] sm:$0xff] %v1543_v54 }
 0x1b5   : > { %v1546_v46 = vpop.f32.mrb[16].mxu1 }
 0x1b6   : > { %v1433_v13 = vpop.f32.mrb[16].mxu0  ;;  %v1548_v29 = vpop.f32.mrb[17].mxu1 }
 0x1b7   : > { %v1547_v48 = vadd.f32 %v1546_v46, %v1433_v13  ;;  %v1435_v6 = vpop.f32.mrb[17].mxu0  ;;  %v1550_v45 = vpop.f32.mrb[18].mxu1 }
 0x1b8   : > { %v1549_v58 = vadd.f32 %v1548_v29, %v1435_v6  ;;  %v1437_v30 = vpop.f32.mrb[18].mxu0  ;;  %v1552_v59 = vpop.f32.mrb[19].mxu1 }
 0x1b9   : > { %2288 = vst [vmem:[%s3937_s28 + $0x1c0] sm:$0xff] %v1547_v48  ;;  %v1551_v11 = vadd.f32 %v1550_v45, %v1437_v30  ;;  %v1439_v44 = vpop.f32.mrb[19].mxu0 }
 0x1ba   : > { %2289 = vst [vmem:[%s3937_s28 + $0x1c8] sm:$0xff] %v1549_v58  ;;  %v1553_v41 = vadd.f32 %v1552_v59, %v1439_v44  ;;  %2654 = vmatmul.mubr.msk.bf16.gmra.mrb[92].mxu1 %vm277_vm0, %v3554_v56 }
 0x1bb   : > { %2295 = vst [vmem:[%s3937_s28 + $0x1f8] sm:$0xff] %v1551_v11  ;;  %2657 = vmatprep.mubr.msk.bf16.mxu1 %vm277_vm0, %v3601_v55 }
 0x1bc   : > { %2296 = vst [vmem:[%s3937_s28 + $0x200] sm:$0xff] %v1553_v41 }
 0x1bd   : > { %v1556_v12 = vpop.f32.mrb[20].mxu1 }
 0x1be   : > { %v1443_v57 = vpop.f32.mrb[20].mxu0  ;;  %v1558_v1 = vpop.f32.mrb[21].mxu1 }
 0x1bf   : > { %v1557_v40 = vadd.f32 %v1556_v12, %v1443_v57  ;;  %v1445_v33 = vpop.f32.mrb[21].mxu0  ;;  %v1560_v19 = vpop.f32.mrb[22].mxu1 }
 0x1c0   : > { %v1559_v24 = vadd.f32 %v1558_v1, %v1445_v33  ;;  %v1447_v62 = vpop.f32.mrb[22].mxu0  ;;  %v1562_v4 = vpop.f32.mrb[23].mxu1 }
 0x1c1   : > { %2302 = vst [vmem:[%s3937_s28 + $0x230] sm:$0xff] %v1557_v40  ;;  %v1561_v31 = vadd.f32 %v1560_v19, %v1447_v62  ;;  %v1449_v56 = vpop.f32.mrb[23].mxu0 }
 0x1c2   : > { %2303 = vst [vmem:[%s3937_s28 + $0x238] sm:$0xff] %v1559_v24  ;;  %v1563_v35 = vadd.f32 %v1562_v4, %v1449_v56  ;;  %2658 = vmatmul.mubr.msk.bf16.gmra.mrb[96].mxu1 %vm277_vm0, %v3649_v60 }
 0x1c3   : > { %2309 = vst [vmem:[%s3937_s28 + $0x268] sm:$0xff] %v1561_v31  ;;  %2661 = vmatprep.mubr.msk.bf16.mxu1 %vm277_vm0, %v3690_v22 }
 0x1c4   : > { %2310 = vst [vmem:[%s3937_s28 + $0x270] sm:$0xff] %v1563_v35 }
 0x1c5   : > { %v1566_v55 = vpop.f32.mrb[24].mxu1 }
 0x1c6   : > { %v1453_v17 = vpop.f32.mrb[24].mxu0  ;;  %v1568_v34 = vpop.f32.mrb[25].mxu1 }
 0x1c7   : > { %v1567_v25 = vadd.f32 %v1566_v55, %v1453_v17  ;;  %v1455_v0 = vpop.f32.mrb[25].mxu0  ;;  %v1570_v27 = vpop.f32.mrb[26].mxu1 }
 0x1c8   : > { %v1569_v53 = vadd.f32 %v1568_v34, %v1455_v0  ;;  %v1457_v36 = vpop.f32.mrb[26].mxu0  ;;  %v1572_v16 = vpop.f32.mrb[27].mxu1 }
 0x1c9   : > { %2316 = vst [vmem:[%s3937_s28 + $0x2a0] sm:$0xff] %v1567_v25  ;;  %v1571_v9 = vadd.f32 %v1570_v27, %v1457_v36  ;;  %v1459_v60 = vpop.f32.mrb[27].mxu0 }
 0x1ca   : > { %2317 = vst [vmem:[%s3937_s28 + $0x2a8] sm:$0xff] %v1569_v53  ;;  %v1573_v63 = vadd.f32 %v1572_v16, %v1459_v60  ;;  %2662 = vmatmul.mubr.msk.bf16.gmra.mrb[100].mxu1 %vm277_vm0, %v3739_v23 }
 0x1cb   : > { %2323 = vst [vmem:[%s3937_s28 + $0x2d8] sm:$0xff] %v1571_v9 }
 0x1cc   : > { %2324 = vst [vmem:[%s3937_s28 + $0x2e0] sm:$0xff] %v1573_v63 }
 0x1cd   : > { %v1576_v22 = vpop.f32.mrb[28].mxu1 }
 0x1ce   : > { %v1463_v39 = vpop.f32.mrb[28].mxu0  ;;  %v1578_v43 = vpop.f32.mrb[29].mxu1 }
 0x1cf   : > { %v1577_v7 = vadd.f32 %v1576_v22, %v1463_v39  ;;  %v1465_v51 = vpop.f32.mrb[29].mxu0  ;;  %v1580_v14 = vpop.f32.mrb[30].mxu1 }
 0x1d0   : > { %v1579_v52 = vadd.f32 %v1578_v43, %v1465_v51  ;;  %v1467_v3 = vpop.f32.mrb[30].mxu0  ;;  %v1582_v61 = vpop.f32.mrb[31].mxu1 }
 0x1d1   : > { %2330 = vst [vmem:[%s3937_s28 + $0x310] sm:$0xff] %v1577_v7  ;;  %v1581_v8 = vadd.f32 %v1580_v14, %v1467_v3  ;;  %v1469_v23 = vpop.f32.mrb[31].mxu0 }
 0x1d2   : > { %2331 = vst [vmem:[%s3937_s28 + $0x318] sm:$0xff] %v1579_v52  ;;  %v1583_v49 = vadd.f32 %v1582_v61, %v1469_v23 }
 0x1d3   : > { %2337 = vst [vmem:[%s3937_s28 + $0x348] sm:$0xff] %v1581_v8 }
 0x1d4   : > { %2338 = vst [vmem:[%s3937_s28 + $0x350] sm:$0xff] %v1583_v49 }
 0x215   : > { %v1732_v10 = vpop.f32.mrb[32].mxu1 }
 0x216   : > { %2233 = vst [vmem:[%s3937_s28 + $0x10] sm:$0xff] %v1732_v10  ;;  %v1734_v47 = vpop.f32.mrb[33].mxu1 }
 0x217   : > { %2234 = vst [vmem:[%s3937_s28 + $0x18] sm:$0xff] %v1734_v47  ;;  %v1958_v32 = vpop.f32.mrb[32].mxu0  ;;  %v1736_v15 = vpop.f32.mrb[34].mxu1 }
 0x218   : > { %2235 = vst [vmem:[%s3937_s28 + $0x20] sm:$0xff] %v1958_v32  ;;  %2241 = vst [vmem:[%s3937_s28 + $0x48] sm:$0xff] %v1736_v15  ;;  %v1960_v50 = vpop.f32.mrb[33].mxu0  ;;  %v1738_v2 = vpop.f32.mrb[35].mxu1 }
 0x219   : > { %2236 = vst [vmem:[%s3937_s28 + $0x28] sm:$0xff] %v1960_v50  ;;  %2242 = vst [vmem:[%s3937_s28 + $0x50] sm:$0xff] %v1738_v2  ;;  %v1962_v20 = vpop.f32.mrb[34].mxu0 }
 0x21a   : > { %2243 = vst [vmem:[%s3937_s28 + $0x58] sm:$0xff] %v1962_v20  ;;  %v1964_v37 = vpop.f32.mrb[35].mxu0 }
 0x21b   : > { %2244 = vst [vmem:[%s3937_s28 + $0x60] sm:$0xff] %v1964_v37 }
 0x21d   : > { %v1742_v28 = vpop.f32.mrb[36].mxu1 }
 0x21e   : > { %2248 = vst [vmem:[%s3937_s28 + $0x80] sm:$0xff] %v1742_v28  ;;  %v1744_v26 = vpop.f32.mrb[37].mxu1 }
 0x21f   : > { %2249 = vst [vmem:[%s3937_s28 + $0x88] sm:$0xff] %v1744_v26  ;;  %v1968_v5 = vpop.f32.mrb[36].mxu0  ;;  %v1746_v42 = vpop.f32.mrb[38].mxu1 }
 0x220   : > { %2250 = vst [vmem:[%s3937_s28 + $0x90] sm:$0xff] %v1968_v5  ;;  %2255 = vst [vmem:[%s3937_s28 + $0xb8] sm:$0xff] %v1746_v42  ;;  %v1970_v21 = vpop.f32.mrb[37].mxu0  ;;  %v1748_v38 = vpop.f32.mrb[39].mxu1 }
 0x221   : > { %2251 = vst [vmem:[%s3937_s28 + $0x98] sm:$0xff] %v1970_v21  ;;  %2256 = vst [vmem:[%s3937_s28 + $0xc0] sm:$0xff] %v1748_v38  ;;  %v1972_v18 = vpop.f32.mrb[38].mxu0 }
 0x222   : > { %2257 = vst [vmem:[%s3937_s28 + $0xc8] sm:$0xff] %v1972_v18  ;;  %v1974_v54 = vpop.f32.mrb[39].mxu0 }
 0x223   : > { %2258 = vst [vmem:[%s3937_s28 + $0xd0] sm:$0xff] %v1974_v54 }
 0x225   : > { %v1752_v46 = vpop.f32.mrb[40].mxu1 }
 0x226   : > { %2262 = vst [vmem:[%s3937_s28 + $0xf0] sm:$0xff] %v1752_v46  ;;  %v1754_v13 = vpop.f32.mrb[41].mxu1 }
 0x227   : > { %2263 = vst [vmem:[%s3937_s28 + $0xf8] sm:$0xff] %v1754_v13  ;;  %v1978_v29 = vpop.f32.mrb[40].mxu0  ;;  %v1756_v48 = vpop.f32.mrb[42].mxu1 }
 0x228   : > { %2264 = vst [vmem:[%s3937_s28 + $0x100] sm:$0xff] %v1978_v29  ;;  %2269 = vst [vmem:[%s3937_s28 + $0x128] sm:$0xff] %v1756_v48  ;;  %v1980_v6 = vpop.f32.mrb[41].mxu0  ;;  %v1758_v45 = vpop.f32.mrb[43].mxu1 }
 0x229   : > { %2265 = vst [vmem:[%s3937_s28 + $0x108] sm:$0xff] %v1980_v6  ;;  %2270 = vst [vmem:[%s3937_s28 + $0x130] sm:$0xff] %v1758_v45  ;;  %v1982_v58 = vpop.f32.mrb[42].mxu0 }
 0x22a   : > { %2271 = vst [vmem:[%s3937_s28 + $0x138] sm:$0xff] %v1982_v58  ;;  %v1984_v30 = vpop.f32.mrb[43].mxu0 }
 0x22b   : > { %2272 = vst [vmem:[%s3937_s28 + $0x140] sm:$0xff] %v1984_v30 }
 0x22d   : > { %v1762_v59 = vpop.f32.mrb[44].mxu1 }
 0x22e   : > { %2276 = vst [vmem:[%s3937_s28 + $0x160] sm:$0xff] %v1762_v59  ;;  %v1764_v11 = vpop.f32.mrb[45].mxu1 }
 0x22f   : > { %2277 = vst [vmem:[%s3937_s28 + $0x168] sm:$0xff] %v1764_v11  ;;  %v1988_v44 = vpop.f32.mrb[44].mxu0  ;;  %v1766_v41 = vpop.f32.mrb[46].mxu1 }
 0x230   : > { %2278 = vst [vmem:[%s3937_s28 + $0x170] sm:$0xff] %v1988_v44  ;;  %2283 = vst [vmem:[%s3937_s28 + $0x198] sm:$0xff] %v1766_v41  ;;  %v1990_v12 = vpop.f32.mrb[45].mxu0  ;;  %v1768_v57 = vpop.f32.mrb[47].mxu1 }
 0x231   : > { %2279 = vst [vmem:[%s3937_s28 + $0x178] sm:$0xff] %v1990_v12  ;;  %2284 = vst [vmem:[%s3937_s28 + $0x1a0] sm:$0xff] %v1768_v57  ;;  %v1992_v1 = vpop.f32.mrb[46].mxu0 }
 0x232   : > { %2285 = vst [vmem:[%s3937_s28 + $0x1a8] sm:$0xff] %v1992_v1  ;;  %v1994_v40 = vpop.f32.mrb[47].mxu0 }
 0x233   : > { %2286 = vst [vmem:[%s3937_s28 + $0x1b0] sm:$0xff] %v1994_v40 }
 0x235   : > { %v1772_v33 = vpop.f32.mrb[48].mxu1 }
 0x236   : > { %2290 = vst [vmem:[%s3937_s28 + $0x1d0] sm:$0xff] %v1772_v33  ;;  %v1774_v19 = vpop.f32.mrb[49].mxu1 }
 0x237   : > { %2291 = vst [vmem:[%s3937_s28 + $0x1d8] sm:$0xff] %v1774_v19  ;;  %v1998_v24 = vpop.f32.mrb[48].mxu0  ;;  %v1776_v62 = vpop.f32.mrb[50].mxu1 }
 0x238   : > { %2292 = vst [vmem:[%s3937_s28 + $0x1e0] sm:$0xff] %v1998_v24  ;;  %2297 = vst [vmem:[%s3937_s28 + $0x208] sm:$0xff] %v1776_v62  ;;  %v2000_v4 = vpop.f32.mrb[49].mxu0  ;;  %v1778_v31 = vpop.f32.mrb[51].mxu1 }
 0x239   : > { %2293 = vst [vmem:[%s3937_s28 + $0x1e8] sm:$0xff] %v2000_v4  ;;  %2298 = vst [vmem:[%s3937_s28 + $0x210] sm:$0xff] %v1778_v31  ;;  %v2002_v56 = vpop.f32.mrb[50].mxu0 }
 0x23a   : > { %2299 = vst [vmem:[%s3937_s28 + $0x218] sm:$0xff] %v2002_v56  ;;  %v2004_v35 = vpop.f32.mrb[51].mxu0 }
 0x23b   : > { %2300 = vst [vmem:[%s3937_s28 + $0x220] sm:$0xff] %v2004_v35 }
 0x23d   : > { %v1782_v55 = vpop.f32.mrb[52].mxu1 }
 0x23e   : > { %2304 = vst [vmem:[%s3937_s28 + $0x240] sm:$0xff] %v1782_v55  ;;  %v1784_v17 = vpop.f32.mrb[53].mxu1 }
 0x23f   : > { %2305 = vst [vmem:[%s3937_s28 + $0x248] sm:$0xff] %v1784_v17  ;;  %v2008_v34 = vpop.f32.mrb[52].mxu0  ;;  %v1786_v25 = vpop.f32.mrb[54].mxu1 }
 0x240   : > { %2306 = vst [vmem:[%s3937_s28 + $0x250] sm:$0xff] %v2008_v34  ;;  %2311 = vst [vmem:[%s3937_s28 + $0x278] sm:$0xff] %v1786_v25  ;;  %v2010_v0 = vpop.f32.mrb[53].mxu0  ;;  %v1788_v27 = vpop.f32.mrb[55].mxu1 }
 0x241   : > { %2307 = vst [vmem:[%s3937_s28 + $0x258] sm:$0xff] %v2010_v0  ;;  %2312 = vst [vmem:[%s3937_s28 + $0x280] sm:$0xff] %v1788_v27  ;;  %v2012_v53 = vpop.f32.mrb[54].mxu0 }
 0x242   : > { %2313 = vst [vmem:[%s3937_s28 + $0x288] sm:$0xff] %v2012_v53  ;;  %v2014_v36 = vpop.f32.mrb[55].mxu0 }
 0x243   : > { %2314 = vst [vmem:[%s3937_s28 + $0x290] sm:$0xff] %v2014_v36 }
 0x245   : > { %v1792_v16 = vpop.f32.mrb[56].mxu1 }
 0x246   : > { %2318 = vst [vmem:[%s3937_s28 + $0x2b0] sm:$0xff] %v1792_v16  ;;  %v1794_v9 = vpop.f32.mrb[57].mxu1 }
 0x247   : > { %2319 = vst [vmem:[%s3937_s28 + $0x2b8] sm:$0xff] %v1794_v9  ;;  %v2018_v60 = vpop.f32.mrb[56].mxu0  ;;  %v1796_v63 = vpop.f32.mrb[58].mxu1 }
 0x248   : > { %2320 = vst [vmem:[%s3937_s28 + $0x2c0] sm:$0xff] %v2018_v60  ;;  %2325 = vst [vmem:[%s3937_s28 + $0x2e8] sm:$0xff] %v1796_v63  ;;  %v2020_v22 = vpop.f32.mrb[57].mxu0  ;;  %v1798_v39 = vpop.f32.mrb[59].mxu1 }
 0x249   : > { %2321 = vst [vmem:[%s3937_s28 + $0x2c8] sm:$0xff] %v2020_v22  ;;  %2326 = vst [vmem:[%s3937_s28 + $0x2f0] sm:$0xff] %v1798_v39  ;;  %v2022_v43 = vpop.f32.mrb[58].mxu0 }
 0x24a   : > { %2327 = vst [vmem:[%s3937_s28 + $0x2f8] sm:$0xff] %v2022_v43  ;;  %v2024_v7 = vpop.f32.mrb[59].mxu0 }
 0x24b   : > { %2328 = vst [vmem:[%s3937_s28 + $0x300] sm:$0xff] %v2024_v7 }
 0x24d   : > { %v1802_v51 = vpop.f32.mrb[60].mxu1 }
 0x24e   : > { %2332 = vst [vmem:[%s3937_s28 + $0x320] sm:$0xff] %v1802_v51  ;;  %v1804_v14 = vpop.f32.mrb[61].mxu1 }
 0x24f   : > { %2333 = vst [vmem:[%s3937_s28 + $0x328] sm:$0xff] %v1804_v14  ;;  %v2028_v52 = vpop.f32.mrb[60].mxu0  ;;  %v1806_v3 = vpop.f32.mrb[62].mxu1 }
 0x250   : > { %2334 = vst [vmem:[%s3937_s28 + $0x330] sm:$0xff] %v2028_v52  ;;  %2339 = vst [vmem:[%s3937_s28 + $0x358] sm:$0xff] %v1806_v3  ;;  %v2030_v61 = vpop.f32.mrb[61].mxu0  ;;  %v1808_v8 = vpop.f32.mrb[63].mxu1 }
 0x251   : > { %2335 = vst [vmem:[%s3937_s28 + $0x338] sm:$0xff] %v2030_v61  ;;  %2340 = vst [vmem:[%s3937_s28 + $0x360] sm:$0xff] %v1808_v8  ;;  %v2032_v23 = vpop.f32.mrb[62].mxu0 }
 0x252   : > { %2341 = vst [vmem:[%s3937_s28 + $0x368] sm:$0xff] %v2032_v23  ;;  %v2034_v49 = vpop.f32.mrb[63].mxu0 }
 0x253   : > { %2342 = vst [vmem:[%s3937_s28 + $0x370] sm:$0xff] %v2034_v49 }
 0x255   : > { %v2599_v10 = vpop.f32.mrb[64].mxu1 }
 0x256   : > { %v2600_v47 = vpop.f32.mrb[65].mxu1 }
 0x257   : > { %v2587_v32 = vpop.f32.mrb[64].mxu0  ;;  %v2601_v15 = vadd.f32 %v2600_v47, %v2599_v10  ;;  %v2602_v50 = vpop.f32.mrb[66].mxu1 }
 0x258   : > { %v2588_v2 = vpop.f32.mrb[65].mxu0  ;;  %v2603_v20 = vpop.f32.mrb[67].mxu1 }
 0x259   : > { %v2589_v37 = vadd.f32 %v2588_v2, %v2587_v32  ;;  %v2590_v28 = vpop.f32.mrb[66].mxu0  ;;  %v2604_v26 = vadd.f32 %v2603_v20, %v2602_v50 }
 0x25a   : > { %v2591_v5 = vpop.f32.mrb[67].mxu0 }
 0x25b   : > { %v2592_v42 = vadd.f32 %v2591_v5, %v2590_v28 }
 0x25d   : > { %v2605_v21 = vpop.f32.mrb[68].mxu1 }
 0x25e   : > { %v2606_v38 = vpop.f32.mrb[69].mxu1 }
 0x25f   : > { %v2593_v18 = vpop.f32.mrb[68].mxu0  ;;  %v2607_v54 = vadd.f32 %v2606_v38, %v2605_v21  ;;  %v2608_v46 = vpop.f32.mrb[70].mxu1 }
 0x260   : > { %v2594_v13 = vpop.f32.mrb[69].mxu0  ;;  %v2609_v29 = vpop.f32.mrb[71].mxu1 }
 0x261   : > { %v2595_v48 = vadd.f32 %v2594_v13, %v2593_v18  ;;  %v2596_v6 = vpop.f32.mrb[70].mxu0  ;;  %v2610_v45 = vadd.f32 %v2609_v29, %v2608_v46 }
 0x262   : > { %v2597_v58 = vpop.f32.mrb[71].mxu0 }
 0x263   : > { %v2598_v30 = vadd.f32 %v2597_v58, %v2596_v6 }
 0x265   : > { %v2611_v59 = vpop.f32.mrb[72].mxu1 }
 0x266   : > { %v2612_v11 = vpop.f32.mrb[73].mxu1 }
 0x267   : > { %v2613_v44 = vadd.f32 %v2612_v11, %v2611_v59  ;;  %v2614_v41 = vpop.f32.mrb[74].mxu1 }
 0x268   : > { %v2615_v12 = vpop.f32.mrb[75].mxu1 }
 0x269   : > { %v2616_v57 = vadd.f32 %v2615_v12, %v2614_v41 }
 0x26d   : > { %v2617_v1 = vpop.f32.mrb[76].mxu1 }
 0x26e   : > { %v2618_v40 = vpop.f32.mrb[77].mxu1 }
 0x26f   : > { %v2619_v33 = vadd.f32 %v2618_v40, %v2617_v1  ;;  %v2620_v19 = vpop.f32.mrb[78].mxu1 }
 0x270   : > { %v2621_v24 = vpop.f32.mrb[79].mxu1 }
 0x271   : > { %v2622_v62 = vadd.f32 %v2621_v24, %v2620_v19 }
 0x275   : > { %v2623_v4 = vpop.f32.mrb[80].mxu1 }
 0x276   : > { %v2624_v31 = vpop.f32.mrb[81].mxu1 }
 0x277   : > { %v2625_v56 = vadd.f32 %v2624_v31, %v2623_v4  ;;  %v2626_v35 = vpop.f32.mrb[82].mxu1 }
 0x278   : > { %v2627_v55 = vpop.f32.mrb[83].mxu1 }
 0x279   : > { %v2628_v17 = vadd.f32 %v2627_v55, %v2626_v35 }
 0x27d   : > { %v2629_v34 = vpop.f32.mrb[84].mxu1 }
 0x27e   : > { %v2630_v25 = vpop.f32.mrb[85].mxu1 }
 0x27f   : > { %v2631_v0 = vadd.f32 %v2630_v25, %v2629_v34  ;;  %v2632_v27 = vpop.f32.mrb[86].mxu1 }
 0x280   : > { %v2633_v53 = vpop.f32.mrb[87].mxu1 }
 0x281   : > { %v2634_v36 = vadd.f32 %v2633_v53, %v2632_v27 }
 0x285   : > { %v2651_v16 = vpop.f32.mrb[88].mxu1 }
 0x286   : > { %v2177_v9 = vadd.f32 %v2651_v16, %v2595_v48  ;;  %v2168_v60 = vpop.f32.mrb[89].mxu1 }
 0x287   : > { %v2169_v63 = vadd.f32 %v2589_v37, %v2168_v60  ;;  %v2652_v22 = vpop.f32.mrb[90].mxu1 }
 0x288   : > { %2252 = vst.msk [vmem:[%s3937_s28 + $0xa0] sm:$0xff] %vm2237_vm1, %v2177_v9  ;;  %v2180_v39 = vadd.f32 %v2652_v22, %v2598_v30  ;;  %v2171_v43 = vpop.f32.mrb[91].mxu1 }
 0x289   : > { %2238 = vst.msk [vmem:[%s3937_s28 + $0x30] sm:$0xff] %vm2237_vm1, %v2169_v63  ;;  %v2172_v7 = vadd.f32 %v2592_v42, %v2171_v43 }
 0x28a   : > { %2259 = vst.msk [vmem:[%s3937_s28 + $0xd8] sm:$0xff] %vm2237_vm1, %v2180_v39 }
 0x28b   : > { %2245 = vst.msk [vmem:[%s3937_s28 + $0x68] sm:$0xff] %vm2237_vm1, %v2172_v7 }
 0x28d   : > { %v2655_v51 = vpop.f32.mrb[92].mxu1 }
 0x28e   : > { %v2193_v14 = vadd.f32 %v2655_v51, %v2607_v54  ;;  %v2184_v52 = vpop.f32.mrb[93].mxu1 }
 0x28f   : > { %v2185_v3 = vadd.f32 %v2601_v15, %v2184_v52  ;;  %v2656_v61 = vpop.f32.mrb[94].mxu1 }
 0x290   : > { %2280 = vst.msk [vmem:[%s3937_s28 + $0x180] sm:$0xff] %vm2237_vm1, %v2193_v14  ;;  %v2196_v8 = vadd.f32 %v2656_v61, %v2610_v45  ;;  %v2187_v23 = vpop.f32.mrb[95].mxu1 }
 0x291   : > { %2266 = vst.msk [vmem:[%s3937_s28 + $0x110] sm:$0xff] %vm2237_vm1, %v2185_v3  ;;  %v2188_v49 = vadd.f32 %v2604_v26, %v2187_v23 }
 0x292   : > { %2287 = vst.msk [vmem:[%s3937_s28 + $0x1b8] sm:$0xff] %vm2237_vm1, %v2196_v8 }
 0x293   : > { %2273 = vst.msk [vmem:[%s3937_s28 + $0x148] sm:$0xff] %vm2237_vm1, %v2188_v49 }
 0x295   : > { %v2659_v10 = vpop.f32.mrb[96].mxu1 }
 0x296   : > { %v2209_v47 = vadd.f32 %v2659_v10, %v2619_v33  ;;  %v2200_v32 = vpop.f32.mrb[97].mxu1 }
 0x297   : > { %v2201_v15 = vadd.f32 %v2613_v44, %v2200_v32  ;;  %v2660_v50 = vpop.f32.mrb[98].mxu1 }
 0x298   : > { %2308 = vst.msk [vmem:[%s3937_s28 + $0x260] sm:$0xff] %vm2237_vm1, %v2209_v47  ;;  %v2212_v2 = vadd.f32 %v2660_v50, %v2622_v62  ;;  %v2203_v20 = vpop.f32.mrb[99].mxu1 }
 0x299   : > { %2294 = vst.msk [vmem:[%s3937_s28 + $0x1f0] sm:$0xff] %vm2237_vm1, %v2201_v15  ;;  %v2204_v37 = vadd.f32 %v2616_v57, %v2203_v20 }
 0x29a   : > { %2315 = vst.msk [vmem:[%s3937_s28 + $0x298] sm:$0xff] %vm2237_vm1, %v2212_v2 }
 0x29b   : > { %2301 = vst.msk [vmem:[%s3937_s28 + $0x228] sm:$0xff] %vm2237_vm1, %v2204_v37 }
 0x29d   : > { %v2663_v28 = vpop.f32.mrb[100].mxu1 }
 0x29e   : > { %v2225_v26 = vadd.f32 %v2663_v28, %v2631_v0  ;;  %v2216_v5 = vpop.f32.mrb[101].mxu1 }
 0x29f   : > { %v2217_v42 = vadd.f32 %v2625_v56, %v2216_v5  ;;  %v2664_v21 = vpop.f32.mrb[102].mxu1 }
 0x2a0   : > { %2336 = vst.msk [vmem:[%s3937_s28 + $0x340] sm:$0xff] %vm2237_vm1, %v2225_v26  ;;  %v2228_v38 = vadd.f32 %v2664_v21, %v2634_v36  ;;  %v2219_v18 = vpop.f32.mrb[103].mxu1 }
 0x2a1   : > { %2322 = vst.msk [vmem:[%s3937_s28 + $0x2d0] sm:$0xff] %vm2237_vm1, %v2217_v42  ;;  %v2220_v54 = vadd.f32 %v2628_v17, %v2219_v18 }
 0x2a2   : > { %2343 = vst.msk [vmem:[%s3937_s28 + $0x378] sm:$0xff] %vm2237_vm1, %v2228_v38 }
 0x2a3   : > { %2329 = vst.msk [vmem:[%s3937_s28 + $0x308] sm:$0xff] %vm2237_vm1, %v2220_v54 }
 0x2a4 PF: > { %s13_s12 = sadd.s32 1, %s3016_s12  }
 0x2a5   : > { %p10_p4 = scmp.ge.s32.totalorder %s13_s12, 4  }
 0x2a7   :  { %12 = sbr.rel (!%p10_p4) target bundleno = 1 (0x1), region = 62 }

</bundles_post_ra>
